<compile_context>
chip_gen: v6e
topology: v6e:2x2x1
jax: 0.10.0
libtpu: 0.0.40
codegen_flags: <defaults>
</compile_context>

<pallas_src>
import functools

import jax
import jax.numpy as jnp
from jax.experimental import pallas as pl
from jax.experimental.pallas import tpu as pltpu


def _round_up(x, m):
    return (x + m - 1) // m * m


def _nbeats_stack_kernel(x_ref,
                         w1, b1, w2, b2, w3, b3, w4, b4,
                         wb, wf, gbw, gbb, gfw, gfb,
                         res_ref, fcst_ref, *, n_blocks):
    """One grid step == one batch tile pushed through all n_blocks blocks."""
    res = x_ref[...]
    fcst = jnp.zeros(fcst_ref.shape, jnp.float32)

    # n_blocks is small and static -> full trace-time unroll; all weights are
    # VMEM-resident stacked tensors indexed statically along the block axis.
    for i in range(n_blocks):
        def lin(h, w, b=None, _i=i):
            y = jnp.dot(h, w[_i], preferred_element_type=jnp.float32)
            if b is not None:
                y = y + b[_i]
            return y

        h = jnp.maximum(lin(res, w1, b1), 0.0)
        h = jnp.maximum(lin(h, w2, b2), 0.0)
        h = jnp.maximum(lin(h, w3, b3), 0.0)
        h = jnp.maximum(lin(h, w4, b4), 0.0)

        theta_b = lin(h, wb)              # fc_b, no bias
        theta_f = lin(h, wf)              # fc_f, no bias
        backcast = lin(theta_b, gbw, gbb)
        forecast = lin(theta_f, gfw, gfb)

        res = res - backcast
        fcst = fcst + forecast

    res_ref[...] = res
    fcst_ref[...] = fcst


def nbeats_stack_pallas(x, params, *, n_blocks, input_dim, output_dim, width,
                        batch_tile=None):
    """x: (B, input_dim) float32.  params: dict of stacked per-block arrays
    with weights in (in, out) layout (pre-transposed nn.Linear weights)."""
    B = x.shape[0]

    # Lane-dense padded dims (zero padding preserves forward semantics).
    d_in = _round_up(input_dim, 128)
    d_out = _round_up(output_dim, 128)
    w_p = _round_up(width, 128)

    tb = batch_tile if batch_tile is not None else min(_round_up(B, 8), 256)
    b_p = _round_up(B, tb)
    n_tiles = b_p // tb

    # ---- host-side zero padding ------------------------------------------
    x_p = jnp.pad(x.astype(jnp.float32), ((0, b_p - B), (0, d_in - input_dim)))

    def pad_w(w, din_p, dout_p):
        nb, din, dout = w.shape
        return jnp.pad(w, ((0, 0), (0, din_p - din), (0, dout_p - dout)))

    def pad_b(b, dout_p):
        nb, one, dout = b.shape
        return jnp.pad(b, ((0, 0), (0, 0), (0, dout_p - dout)))

    pp = dict(
        w1=pad_w(params["w1"], d_in, w_p), b1=pad_b(params["b1"], w_p),
        w2=pad_w(params["w2"], w_p, w_p),  b2=pad_b(params["b2"], w_p),
        w3=pad_w(params["w3"], w_p, w_p),  b3=pad_b(params["b3"], w_p),
        w4=pad_w(params["w4"], w_p, w_p),  b4=pad_b(params["b4"], w_p),
        wb=pad_w(params["wb"], w_p, w_p),
        wf=pad_w(params["wf"], w_p, w_p),
        gbw=pad_w(params["gbw"], w_p, d_in),  gbb=pad_b(params["gbb"], d_in),
        gfw=pad_w(params["gfw"], w_p, d_out), gfb=pad_b(params["gfb"], d_out),
    )

    # ---- specs -------------------------------------------------------------
    def wspec(din, dout):
        # full stacked weight resident in VMEM, same block for every tile
        return pl.BlockSpec((n_blocks, din, dout), lambda i: (0, 0, 0))

    def bspec(dout):
        return pl.BlockSpec((n_blocks, 1, dout), lambda i: (0, 0, 0))

    in_specs = [
        pl.BlockSpec((tb, d_in), lambda i: (i, 0)),       # x (batch tile)
        wspec(d_in, w_p), bspec(w_p),                     # fc1
        wspec(w_p, w_p), bspec(w_p),                      # fc2
        wspec(w_p, w_p), bspec(w_p),                      # fc3
        wspec(w_p, w_p), bspec(w_p),                      # fc4
        wspec(w_p, w_p),                                  # fc_b (no bias)
        wspec(w_p, w_p),                                  # fc_f (no bias)
        wspec(w_p, d_in), bspec(d_in),                    # g_b
        wspec(w_p, d_out), bspec(d_out),                  # g_f
    ]
    out_specs = [
        pl.BlockSpec((tb, d_in), lambda i: (i, 0)),       # stack_residual
        pl.BlockSpec((tb, d_out), lambda i: (i, 0)),      # stack_forecast
    ]

    grid_spec = pltpu.PrefetchScalarGridSpec(
        num_scalar_prefetch=0,
        grid=(n_tiles,),
        in_specs=in_specs,
        out_specs=out_specs,
    )

    fn = pl.pallas_call(
        functools.partial(_nbeats_stack_kernel, n_blocks=n_blocks),
        grid_spec=grid_spec,
        out_shape=(
            jax.ShapeDtypeStruct((b_p, d_in), jnp.float32),
            jax.ShapeDtypeStruct((b_p, d_out), jnp.float32),
        ),
        # alias padded x -> residual output (same shape/dtype, free copy removal)
        input_output_aliases={0: 0},
        compiler_params=pltpu.CompilerParams(
            # batch tiles are independent -> parallel (v7x megacore sharding)
            dimension_semantics=("parallel",),
            vmem_limit_bytes=32 * 1024 * 1024,
        ),
    )

    res_p, fcst_p = fn(
        x_p,
        pp["w1"], pp["b1"],
        pp["w2"], pp["b2"],
        pp["w3"], pp["b3"],
        pp["w4"], pp["b4"],
        pp["wb"], pp["wf"],
        pp["gbw"], pp["gbb"],
        pp["gfw"], pp["gfb"],
    )
    # strip padding back to the logical shapes
    return res_p[:B, :input_dim], fcst_p[:B, :output_dim]


def init_params(key, n_blocks, input_dim, output_dim, width):
    """Deterministic synthetic parameter init (weights in (in, out) layout)."""
    ks = jax.random.split(key, 14)
    s = 0.1

    def W(k, din, dout):
        return jax.random.normal(k, (n_blocks, din, dout), jnp.float32) * s

    def Bb(k, dout):
        return jax.random.normal(k, (n_blocks, 1, dout), jnp.float32) * s

    return dict(
        w1=W(ks[0], input_dim, width), b1=Bb(ks[1], width),
        w2=W(ks[2], width, width),     b2=Bb(ks[3], width),
        w3=W(ks[4], width, width),     b3=Bb(ks[5], width),
        w4=W(ks[6], width, width),     b4=Bb(ks[7], width),
        wb=W(ks[8], width, width),
        wf=W(ks[9], width, width),
        gbw=W(ks[10], width, input_dim),  gbb=Bb(ks[11], input_dim),
        gfw=W(ks[12], width, output_dim), gfb=Bb(ks[13], output_dim),
    )


def nbeats_stack_ref(x, params, n_blocks):
    """Pure-JAX reference matching the PyTorch forward."""
    fcst = None
    for i in range(n_blocks):
        h = jax.nn.relu(x @ params["w1"][i] + params["b1"][i])
        h = jax.nn.relu(h @ params["w2"][i] + params["b2"][i])
        h = jax.nn.relu(h @ params["w3"][i] + params["b3"][i])
        h = jax.nn.relu(h @ params["w4"][i] + params["b4"][i])
        theta_b = h @ params["wb"][i]
        theta_f = h @ params["wf"][i]
        backcast = theta_b @ params["gbw"][i] + params["gbb"][i]
        forecast = theta_f @ params["gfw"][i] + params["gfb"][i]
        x = x - backcast
        fcst = forecast if fcst is None else fcst + forecast
    return x, fcst


if __name__ == "__main__":
    n_blocks, input_dim, output_dim, width = 3, 16, 8, 32
    batch = 8

    key = jax.random.PRNGKey(0)
    kx, kp = jax.random.split(key)
    x = jax.random.normal(kx, (batch, input_dim), jnp.float32)
    params = init_params(kp, n_blocks, input_dim, output_dim, width)

    residual, forecast = nbeats_stack_pallas(
        x, params,
        n_blocks=n_blocks, input_dim=input_dim,
        output_dim=output_dim, width=width,
    )
    residual = jax.block_until_ready(residual)
    forecast = jax.block_until_ready(forecast)

    res_ref, fcst_ref = nbeats_stack_ref(x, params, n_blocks)
    assert jnp.allclose(residual, res_ref, atol=1e-4, rtol=1e-4), "residual mismatch"
    assert jnp.allclose(forecast, fcst_ref, atol=1e-4, rtol=1e-4), "forecast mismatch"

    print("KERNEL_OK")
</pallas_src>

<mosaic_0001>
module attributes {stable_mosaic.version = 11 : i64} {
  func.func @_nbeats_stack_kernel(%arg0: i32, %arg1: memref<8x128xf32, #tpu.memory_space<vmem>>, %arg2: memref<3x128x128xf32, #tpu.memory_space<vmem>>, %arg3: memref<3x1x128xf32, #tpu.memory_space<vmem>>, %arg4: memref<3x128x128xf32, #tpu.memory_space<vmem>>, %arg5: memref<3x1x128xf32, #tpu.memory_space<vmem>>, %arg6: memref<3x128x128xf32, #tpu.memory_space<vmem>>, %arg7: memref<3x1x128xf32, #tpu.memory_space<vmem>>, %arg8: memref<3x128x128xf32, #tpu.memory_space<vmem>>, %arg9: memref<3x1x128xf32, #tpu.memory_space<vmem>>, %arg10: memref<3x128x128xf32, #tpu.memory_space<vmem>>, %arg11: memref<3x128x128xf32, #tpu.memory_space<vmem>>, %arg12: memref<3x128x128xf32, #tpu.memory_space<vmem>>, %arg13: memref<3x1x128xf32, #tpu.memory_space<vmem>>, %arg14: memref<3x128x128xf32, #tpu.memory_space<vmem>>, %arg15: memref<3x1x128xf32, #tpu.memory_space<vmem>>, %arg16: memref<8x128xf32, #tpu.memory_space<vmem>>, %arg17: memref<8x128xf32, #tpu.memory_space<vmem>>) attributes {dimension_semantics = [#tpu.dimension_semantics<parallel>], iteration_bounds = array<i64: 1>, scalar_prefetch = 0 : i64, scratch_operands = 0 : i64, tpu.core_type = #tpu.core_type<tc>, window_params = [{transform_indices = @transform_0, window_bounds = array<i64: 8, 128>}, {pipeline_mode = #tpu.pipeline_mode<synchronous>, transform_indices = @transform_1, window_bounds = array<i64: 3, 128, 128>}, {pipeline_mode = #tpu.pipeline_mode<synchronous>, transform_indices = @transform_2, window_bounds = array<i64: 3, 1, 128>}, {pipeline_mode = #tpu.pipeline_mode<synchronous>, transform_indices = @transform_3, window_bounds = array<i64: 3, 128, 128>}, {pipeline_mode = #tpu.pipeline_mode<synchronous>, transform_indices = @transform_4, window_bounds = array<i64: 3, 1, 128>}, {pipeline_mode = #tpu.pipeline_mode<synchronous>, transform_indices = @transform_5, window_bounds = array<i64: 3, 128, 128>}, {pipeline_mode = #tpu.pipeline_mode<synchronous>, transform_indices = @transform_6, window_bounds = array<i64: 3, 1, 128>}, {pipeline_mode = #tpu.pipeline_mode<synchronous>, transform_indices = @transform_7, window_bounds = array<i64: 3, 128, 128>}, {pipeline_mode = #tpu.pipeline_mode<synchronous>, transform_indices = @transform_8, window_bounds = array<i64: 3, 1, 128>}, {pipeline_mode = #tpu.pipeline_mode<synchronous>, transform_indices = @transform_9, window_bounds = array<i64: 3, 128, 128>}, {pipeline_mode = #tpu.pipeline_mode<synchronous>, transform_indices = @transform_10, window_bounds = array<i64: 3, 128, 128>}, {pipeline_mode = #tpu.pipeline_mode<synchronous>, transform_indices = @transform_11, window_bounds = array<i64: 3, 128, 128>}, {pipeline_mode = #tpu.pipeline_mode<synchronous>, transform_indices = @transform_12, window_bounds = array<i64: 3, 1, 128>}, {pipeline_mode = #tpu.pipeline_mode<synchronous>, transform_indices = @transform_13, window_bounds = array<i64: 3, 128, 128>}, {pipeline_mode = #tpu.pipeline_mode<synchronous>, transform_indices = @transform_14, window_bounds = array<i64: 3, 1, 128>}, {transform_indices = @transform_15, window_bounds = array<i64: 8, 128>}, {transform_indices = @transform_16, window_bounds = array<i64: 8, 128>}]} {
    %c0 = arith.constant 0 : index
    %c0_0 = arith.constant 0 : index
    %0 = vector.load %arg1[%c0, %c0_0] : memref<8x128xf32, #tpu.memory_space<vmem>>, vector<8x128xf32>
    %cst = arith.constant 0.000000e+00 : f32
    %1 = vector.broadcast %cst : f32 to vector<8x128xf32>
    %c0_1 = arith.constant 0 : index
    %c0_2 = arith.constant 0 : index
    %c0_3 = arith.constant 0 : index
    %2 = vector.load %arg2[%c0_1, %c0_2, %c0_3] : memref<3x128x128xf32, #tpu.memory_space<vmem>>, vector<1x128x128xf32>
    %3 = vector.shape_cast %2 : vector<1x128x128xf32> to vector<128x128xf32>
    %cst_4 = arith.constant dense<0.000000e+00> : vector<8x128xf32>
    %4 = tpu.matmul %0, %3, %cst_4 {dimension_numbers = #tpu.dot_dimension_numbers<[1], [0], [0], [1], [0, 0, 1, 1], [], []>} : vector<8x128xf32>, vector<128x128xf32>, vector<8x128xf32> -> vector<8x128xf32>
    %c0_5 = arith.constant 0 : index
    %c0_6 = arith.constant 0 : index
    %c0_7 = arith.constant 0 : index
    %5 = vector.load %arg3[%c0_5, %c0_6, %c0_7] : memref<3x1x128xf32, #tpu.memory_space<vmem>>, vector<1x1x128xf32>
    %6 = vector.shape_cast %5 : vector<1x1x128xf32> to vector<1x128xf32>
    %7 = vector.broadcast %6 : vector<1x128xf32> to vector<8x128xf32>
    %8 = arith.addf %4, %7 : vector<8x128xf32>
    %cst_8 = arith.constant 0.000000e+00 : f32
    %9 = vector.broadcast %cst_8 : f32 to vector<8x128xf32>
    %10 = arith.maximumf %8, %9 : vector<8x128xf32>
    %c0_9 = arith.constant 0 : index
    %c0_10 = arith.constant 0 : index
    %c0_11 = arith.constant 0 : index
    %11 = vector.load %arg4[%c0_9, %c0_10, %c0_11] : memref<3x128x128xf32, #tpu.memory_space<vmem>>, vector<1x128x128xf32>
    %12 = vector.shape_cast %11 : vector<1x128x128xf32> to vector<128x128xf32>
    %cst_12 = arith.constant dense<0.000000e+00> : vector<8x128xf32>
    %13 = tpu.matmul %10, %12, %cst_12 {dimension_numbers = #tpu.dot_dimension_numbers<[1], [0], [0], [1], [0, 0, 1, 1], [], []>} : vector<8x128xf32>, vector<128x128xf32>, vector<8x128xf32> -> vector<8x128xf32>
    %c0_13 = arith.constant 0 : index
    %c0_14 = arith.constant 0 : index
    %c0_15 = arith.constant 0 : index
    %14 = vector.load %arg5[%c0_13, %c0_14, %c0_15] : memref<3x1x128xf32, #tpu.memory_space<vmem>>, vector<1x1x128xf32>
    %15 = vector.shape_cast %14 : vector<1x1x128xf32> to vector<1x128xf32>
    %16 = vector.broadcast %15 : vector<1x128xf32> to vector<8x128xf32>
    %17 = arith.addf %13, %16 : vector<8x128xf32>
    %cst_16 = arith.constant 0.000000e+00 : f32
    %18 = vector.broadcast %cst_16 : f32 to vector<8x128xf32>
    %19 = arith.maximumf %17, %18 : vector<8x128xf32>
    %c0_17 = arith.constant 0 : index
    %c0_18 = arith.constant 0 : index
    %c0_19 = arith.constant 0 : index
    %20 = vector.load %arg6[%c0_17, %c0_18, %c0_19] : memref<3x128x128xf32, #tpu.memory_space<vmem>>, vector<1x128x128xf32>
    %21 = vector.shape_cast %20 : vector<1x128x128xf32> to vector<128x128xf32>
    %cst_20 = arith.constant dense<0.000000e+00> : vector<8x128xf32>
    %22 = tpu.matmul %19, %21, %cst_20 {dimension_numbers = #tpu.dot_dimension_numbers<[1], [0], [0], [1], [0, 0, 1, 1], [], []>} : vector<8x128xf32>, vector<128x128xf32>, vector<8x128xf32> -> vector<8x128xf32>
    %c0_21 = arith.constant 0 : index
    %c0_22 = arith.constant 0 : index
    %c0_23 = arith.constant 0 : index
    %23 = vector.load %arg7[%c0_21, %c0_22, %c0_23] : memref<3x1x128xf32, #tpu.memory_space<vmem>>, vector<1x1x128xf32>
    %24 = vector.shape_cast %23 : vector<1x1x128xf32> to vector<1x128xf32>
    %25 = vector.broadcast %24 : vector<1x128xf32> to vector<8x128xf32>
    %26 = arith.addf %22, %25 : vector<8x128xf32>
    %cst_24 = arith.constant 0.000000e+00 : f32
    %27 = vector.broadcast %cst_24 : f32 to vector<8x128xf32>
    %28 = arith.maximumf %26, %27 : vector<8x128xf32>
    %c0_25 = arith.constant 0 : index
    %c0_26 = arith.constant 0 : index
    %c0_27 = arith.constant 0 : index
    %29 = vector.load %arg8[%c0_25, %c0_26, %c0_27] : memref<3x128x128xf32, #tpu.memory_space<vmem>>, vector<1x128x128xf32>
    %30 = vector.shape_cast %29 : vector<1x128x128xf32> to vector<128x128xf32>
    %cst_28 = arith.constant dense<0.000000e+00> : vector<8x128xf32>
    %31 = tpu.matmul %28, %30, %cst_28 {dimension_numbers = #tpu.dot_dimension_numbers<[1], [0], [0], [1], [0, 0, 1, 1], [], []>} : vector<8x128xf32>, vector<128x128xf32>, vector<8x128xf32> -> vector<8x128xf32>
    %c0_29 = arith.constant 0 : index
    %c0_30 = arith.constant 0 : index
    %c0_31 = arith.constant 0 : index
    %32 = vector.load %arg9[%c0_29, %c0_30, %c0_31] : memref<3x1x128xf32, #tpu.memory_space<vmem>>, vector<1x1x128xf32>
    %33 = vector.shape_cast %32 : vector<1x1x128xf32> to vector<1x128xf32>
    %34 = vector.broadcast %33 : vector<1x128xf32> to vector<8x128xf32>
    %35 = arith.addf %31, %34 : vector<8x128xf32>
    %cst_32 = arith.constant 0.000000e+00 : f32
    %36 = vector.broadcast %cst_32 : f32 to vector<8x128xf32>
    %37 = arith.maximumf %35, %36 : vector<8x128xf32>
    %c0_33 = arith.constant 0 : index
    %c0_34 = arith.constant 0 : index
    %c0_35 = arith.constant 0 : index
    %38 = vector.load %arg10[%c0_33, %c0_34, %c0_35] : memref<3x128x128xf32, #tpu.memory_space<vmem>>, vector<1x128x128xf32>
    %39 = vector.shape_cast %38 : vector<1x128x128xf32> to vector<128x128xf32>
    %cst_36 = arith.constant dense<0.000000e+00> : vector<8x128xf32>
    %40 = tpu.matmul %37, %39, %cst_36 {dimension_numbers = #tpu.dot_dimension_numbers<[1], [0], [0], [1], [0, 0, 1, 1], [], []>} : vector<8x128xf32>, vector<128x128xf32>, vector<8x128xf32> -> vector<8x128xf32>
    %c0_37 = arith.constant 0 : index
    %c0_38 = arith.constant 0 : index
    %c0_39 = arith.constant 0 : index
    %41 = vector.load %arg11[%c0_37, %c0_38, %c0_39] : memref<3x128x128xf32, #tpu.memory_space<vmem>>, vector<1x128x128xf32>
    %42 = vector.shape_cast %41 : vector<1x128x128xf32> to vector<128x128xf32>
    %cst_40 = arith.constant dense<0.000000e+00> : vector<8x128xf32>
    %43 = tpu.matmul %37, %42, %cst_40 {dimension_numbers = #tpu.dot_dimension_numbers<[1], [0], [0], [1], [0, 0, 1, 1], [], []>} : vector<8x128xf32>, vector<128x128xf32>, vector<8x128xf32> -> vector<8x128xf32>
    %c0_41 = arith.constant 0 : index
    %c0_42 = arith.constant 0 : index
    %c0_43 = arith.constant 0 : index
    %44 = vector.load %arg12[%c0_41, %c0_42, %c0_43] : memref<3x128x128xf32, #tpu.memory_space<vmem>>, vector<1x128x128xf32>
    %45 = vector.shape_cast %44 : vector<1x128x128xf32> to vector<128x128xf32>
    %cst_44 = arith.constant dense<0.000000e+00> : vector<8x128xf32>
    %46 = tpu.matmul %40, %45, %cst_44 {dimension_numbers = #tpu.dot_dimension_numbers<[1], [0], [0], [1], [0, 0, 1, 1], [], []>} : vector<8x128xf32>, vector<128x128xf32>, vector<8x128xf32> -> vector<8x128xf32>
    %c0_45 = arith.constant 0 : index
    %c0_46 = arith.constant 0 : index
    %c0_47 = arith.constant 0 : index
    %47 = vector.load %arg13[%c0_45, %c0_46, %c0_47] : memref<3x1x128xf32, #tpu.memory_space<vmem>>, vector<1x1x128xf32>
    %48 = vector.shape_cast %47 : vector<1x1x128xf32> to vector<1x128xf32>
    %49 = vector.broadcast %48 : vector<1x128xf32> to vector<8x128xf32>
    %50 = arith.addf %46, %49 : vector<8x128xf32>
    %c0_48 = arith.constant 0 : index
    %c0_49 = arith.constant 0 : index
    %c0_50 = arith.constant 0 : index
    %51 = vector.load %arg14[%c0_48, %c0_49, %c0_50] : memref<3x128x128xf32, #tpu.memory_space<vmem>>, vector<1x128x128xf32>
    %52 = vector.shape_cast %51 : vector<1x128x128xf32> to vector<128x128xf32>
    %cst_51 = arith.constant dense<0.000000e+00> : vector<8x128xf32>
    %53 = tpu.matmul %43, %52, %cst_51 {dimension_numbers = #tpu.dot_dimension_numbers<[1], [0], [0], [1], [0, 0, 1, 1], [], []>} : vector<8x128xf32>, vector<128x128xf32>, vector<8x128xf32> -> vector<8x128xf32>
    %c0_52 = arith.constant 0 : index
    %c0_53 = arith.constant 0 : index
    %c0_54 = arith.constant 0 : index
    %54 = vector.load %arg15[%c0_52, %c0_53, %c0_54] : memref<3x1x128xf32, #tpu.memory_space<vmem>>, vector<1x1x128xf32>
    %55 = vector.shape_cast %54 : vector<1x1x128xf32> to vector<1x128xf32>
    %56 = vector.broadcast %55 : vector<1x128xf32> to vector<8x128xf32>
    %57 = arith.addf %53, %56 : vector<8x128xf32>
    %58 = arith.subf %0, %50 : vector<8x128xf32>
    %59 = arith.addf %1, %57 : vector<8x128xf32>
    %c1 = arith.constant 1 : index
    %c0_55 = arith.constant 0 : index
    %c0_56 = arith.constant 0 : index
    %60 = vector.load %arg2[%c1, %c0_55, %c0_56] : memref<3x128x128xf32, #tpu.memory_space<vmem>>, vector<1x128x128xf32>
    %61 = vector.shape_cast %60 : vector<1x128x128xf32> to vector<128x128xf32>
    %cst_57 = arith.constant dense<0.000000e+00> : vector<8x128xf32>
    %62 = tpu.matmul %58, %61, %cst_57 {dimension_numbers = #tpu.dot_dimension_numbers<[1], [0], [0], [1], [0, 0, 1, 1], [], []>} : vector<8x128xf32>, vector<128x128xf32>, vector<8x128xf32> -> vector<8x128xf32>
    %c1_58 = arith.constant 1 : index
    %c0_59 = arith.constant 0 : index
    %c0_60 = arith.constant 0 : index
    %63 = vector.load %arg3[%c1_58, %c0_59, %c0_60] : memref<3x1x128xf32, #tpu.memory_space<vmem>>, vector<1x1x128xf32>
    %64 = vector.shape_cast %63 : vector<1x1x128xf32> to vector<1x128xf32>
    %65 = vector.broadcast %64 : vector<1x128xf32> to vector<8x128xf32>
    %66 = arith.addf %62, %65 : vector<8x128xf32>
    %cst_61 = arith.constant 0.000000e+00 : f32
    %67 = vector.broadcast %cst_61 : f32 to vector<8x128xf32>
    %68 = arith.maximumf %66, %67 : vector<8x128xf32>
    %c1_62 = arith.constant 1 : index
    %c0_63 = arith.constant 0 : index
    %c0_64 = arith.constant 0 : index
    %69 = vector.load %arg4[%c1_62, %c0_63, %c0_64] : memref<3x128x128xf32, #tpu.memory_space<vmem>>, vector<1x128x128xf32>
    %70 = vector.shape_cast %69 : vector<1x128x128xf32> to vector<128x128xf32>
    %cst_65 = arith.constant dense<0.000000e+00> : vector<8x128xf32>
    %71 = tpu.matmul %68, %70, %cst_65 {dimension_numbers = #tpu.dot_dimension_numbers<[1], [0], [0], [1], [0, 0, 1, 1], [], []>} : vector<8x128xf32>, vector<128x128xf32>, vector<8x128xf32> -> vector<8x128xf32>
    %c1_66 = arith.constant 1 : index
    %c0_67 = arith.constant 0 : index
    %c0_68 = arith.constant 0 : index
    %72 = vector.load %arg5[%c1_66, %c0_67, %c0_68] : memref<3x1x128xf32, #tpu.memory_space<vmem>>, vector<1x1x128xf32>
    %73 = vector.shape_cast %72 : vector<1x1x128xf32> to vector<1x128xf32>
    %74 = vector.broadcast %73 : vector<1x128xf32> to vector<8x128xf32>
    %75 = arith.addf %71, %74 : vector<8x128xf32>
    %cst_69 = arith.constant 0.000000e+00 : f32
    %76 = vector.broadcast %cst_69 : f32 to vector<8x128xf32>
    %77 = arith.maximumf %75, %76 : vector<8x128xf32>
    %c1_70 = arith.constant 1 : index
    %c0_71 = arith.constant 0 : index
    %c0_72 = arith.constant 0 : index
    %78 = vector.load %arg6[%c1_70, %c0_71, %c0_72] : memref<3x128x128xf32, #tpu.memory_space<vmem>>, vector<1x128x128xf32>
    %79 = vector.shape_cast %78 : vector<1x128x128xf32> to vector<128x128xf32>
    %cst_73 = arith.constant dense<0.000000e+00> : vector<8x128xf32>
    %80 = tpu.matmul %77, %79, %cst_73 {dimension_numbers = #tpu.dot_dimension_numbers<[1], [0], [0], [1], [0, 0, 1, 1], [], []>} : vector<8x128xf32>, vector<128x128xf32>, vector<8x128xf32> -> vector<8x128xf32>
    %c1_74 = arith.constant 1 : index
    %c0_75 = arith.constant 0 : index
    %c0_76 = arith.constant 0 : index
    %81 = vector.load %arg7[%c1_74, %c0_75, %c0_76] : memref<3x1x128xf32, #tpu.memory_space<vmem>>, vector<1x1x128xf32>
    %82 = vector.shape_cast %81 : vector<1x1x128xf32> to vector<1x128xf32>
    %83 = vector.broadcast %82 : vector<1x128xf32> to vector<8x128xf32>
    %84 = arith.addf %80, %83 : vector<8x128xf32>
    %cst_77 = arith.constant 0.000000e+00 : f32
    %85 = vector.broadcast %cst_77 : f32 to vector<8x128xf32>
    %86 = arith.maximumf %84, %85 : vector<8x128xf32>
    %c1_78 = arith.constant 1 : index
    %c0_79 = arith.constant 0 : index
    %c0_80 = arith.constant 0 : index
    %87 = vector.load %arg8[%c1_78, %c0_79, %c0_80] : memref<3x128x128xf32, #tpu.memory_space<vmem>>, vector<1x128x128xf32>
    %88 = vector.shape_cast %87 : vector<1x128x128xf32> to vector<128x128xf32>
    %cst_81 = arith.constant dense<0.000000e+00> : vector<8x128xf32>
    %89 = tpu.matmul %86, %88, %cst_81 {dimension_numbers = #tpu.dot_dimension_numbers<[1], [0], [0], [1], [0, 0, 1, 1], [], []>} : vector<8x128xf32>, vector<128x128xf32>, vector<8x128xf32> -> vector<8x128xf32>
    %c1_82 = arith.constant 1 : index
    %c0_83 = arith.constant 0 : index
    %c0_84 = arith.constant 0 : index
    %90 = vector.load %arg9[%c1_82, %c0_83, %c0_84] : memref<3x1x128xf32, #tpu.memory_space<vmem>>, vector<1x1x128xf32>
    %91 = vector.shape_cast %90 : vector<1x1x128xf32> to vector<1x128xf32>
    %92 = vector.broadcast %91 : vector<1x128xf32> to vector<8x128xf32>
    %93 = arith.addf %89, %92 : vector<8x128xf32>
    %cst_85 = arith.constant 0.000000e+00 : f32
    %94 = vector.broadcast %cst_85 : f32 to vector<8x128xf32>
    %95 = arith.maximumf %93, %94 : vector<8x128xf32>
    %c1_86 = arith.constant 1 : index
    %c0_87 = arith.constant 0 : index
    %c0_88 = arith.constant 0 : index
    %96 = vector.load %arg10[%c1_86, %c0_87, %c0_88] : memref<3x128x128xf32, #tpu.memory_space<vmem>>, vector<1x128x128xf32>
    %97 = vector.shape_cast %96 : vector<1x128x128xf32> to vector<128x128xf32>
    %cst_89 = arith.constant dense<0.000000e+00> : vector<8x128xf32>
    %98 = tpu.matmul %95, %97, %cst_89 {dimension_numbers = #tpu.dot_dimension_numbers<[1], [0], [0], [1], [0, 0, 1, 1], [], []>} : vector<8x128xf32>, vector<128x128xf32>, vector<8x128xf32> -> vector<8x128xf32>
    %c1_90 = arith.constant 1 : index
    %c0_91 = arith.constant 0 : index
    %c0_92 = arith.constant 0 : index
    %99 = vector.load %arg11[%c1_90, %c0_91, %c0_92] : memref<3x128x128xf32, #tpu.memory_space<vmem>>, vector<1x128x128xf32>
    %100 = vector.shape_cast %99 : vector<1x128x128xf32> to vector<128x128xf32>
    %cst_93 = arith.constant dense<0.000000e+00> : vector<8x128xf32>
    %101 = tpu.matmul %95, %100, %cst_93 {dimension_numbers = #tpu.dot_dimension_numbers<[1], [0], [0], [1], [0, 0, 1, 1], [], []>} : vector<8x128xf32>, vector<128x128xf32>, vector<8x128xf32> -> vector<8x128xf32>
    %c1_94 = arith.constant 1 : index
    %c0_95 = arith.constant 0 : index
    %c0_96 = arith.constant 0 : index
    %102 = vector.load %arg12[%c1_94, %c0_95, %c0_96] : memref<3x128x128xf32, #tpu.memory_space<vmem>>, vector<1x128x128xf32>
    %103 = vector.shape_cast %102 : vector<1x128x128xf32> to vector<128x128xf32>
    %cst_97 = arith.constant dense<0.000000e+00> : vector<8x128xf32>
    %104 = tpu.matmul %98, %103, %cst_97 {dimension_numbers = #tpu.dot_dimension_numbers<[1], [0], [0], [1], [0, 0, 1, 1], [], []>} : vector<8x128xf32>, vector<128x128xf32>, vector<8x128xf32> -> vector<8x128xf32>
    %c1_98 = arith.constant 1 : index
    %c0_99 = arith.constant 0 : index
    %c0_100 = arith.constant 0 : index
    %105 = vector.load %arg13[%c1_98, %c0_99, %c0_100] : memref<3x1x128xf32, #tpu.memory_space<vmem>>, vector<1x1x128xf32>
    %106 = vector.shape_cast %105 : vector<1x1x128xf32> to vector<1x128xf32>
    %107 = vector.broadcast %106 : vector<1x128xf32> to vector<8x128xf32>
    %108 = arith.addf %104, %107 : vector<8x128xf32>
    %c1_101 = arith.constant 1 : index
    %c0_102 = arith.constant 0 : index
    %c0_103 = arith.constant 0 : index
    %109 = vector.load %arg14[%c1_101, %c0_102, %c0_103] : memref<3x128x128xf32, #tpu.memory_space<vmem>>, vector<1x128x128xf32>
    %110 = vector.shape_cast %109 : vector<1x128x128xf32> to vector<128x128xf32>
    %cst_104 = arith.constant dense<0.000000e+00> : vector<8x128xf32>
    %111 = tpu.matmul %101, %110, %cst_104 {dimension_numbers = #tpu.dot_dimension_numbers<[1], [0], [0], [1], [0, 0, 1, 1], [], []>} : vector<8x128xf32>, vector<128x128xf32>, vector<8x128xf32> -> vector<8x128xf32>
    %c1_105 = arith.constant 1 : index
    %c0_106 = arith.constant 0 : index
    %c0_107 = arith.constant 0 : index
    %112 = vector.load %arg15[%c1_105, %c0_106, %c0_107] : memref<3x1x128xf32, #tpu.memory_space<vmem>>, vector<1x1x128xf32>
    %113 = vector.shape_cast %112 : vector<1x1x128xf32> to vector<1x128xf32>
    %114 = vector.broadcast %113 : vector<1x128xf32> to vector<8x128xf32>
    %115 = arith.addf %111, %114 : vector<8x128xf32>
    %116 = arith.subf %58, %108 : vector<8x128xf32>
    %117 = arith.addf %59, %115 : vector<8x128xf32>
    %c2 = arith.constant 2 : index
    %c0_108 = arith.constant 0 : index
    %c0_109 = arith.constant 0 : index
    %118 = vector.load %arg2[%c2, %c0_108, %c0_109] : memref<3x128x128xf32, #tpu.memory_space<vmem>>, vector<1x128x128xf32>
    %119 = vector.shape_cast %118 : vector<1x128x128xf32> to vector<128x128xf32>
    %cst_110 = arith.constant dense<0.000000e+00> : vector<8x128xf32>
    %120 = tpu.matmul %116, %119, %cst_110 {dimension_numbers = #tpu.dot_dimension_numbers<[1], [0], [0], [1], [0, 0, 1, 1], [], []>} : vector<8x128xf32>, vector<128x128xf32>, vector<8x128xf32> -> vector<8x128xf32>
    %c2_111 = arith.constant 2 : index
    %c0_112 = arith.constant 0 : index
    %c0_113 = arith.constant 0 : index
    %121 = vector.load %arg3[%c2_111, %c0_112, %c0_113] : memref<3x1x128xf32, #tpu.memory_space<vmem>>, vector<1x1x128xf32>
    %122 = vector.shape_cast %121 : vector<1x1x128xf32> to vector<1x128xf32>
    %123 = vector.broadcast %122 : vector<1x128xf32> to vector<8x128xf32>
    %124 = arith.addf %120, %123 : vector<8x128xf32>
    %cst_114 = arith.constant 0.000000e+00 : f32
    %125 = vector.broadcast %cst_114 : f32 to vector<8x128xf32>
    %126 = arith.maximumf %124, %125 : vector<8x128xf32>
    %c2_115 = arith.constant 2 : index
    %c0_116 = arith.constant 0 : index
    %c0_117 = arith.constant 0 : index
    %127 = vector.load %arg4[%c2_115, %c0_116, %c0_117] : memref<3x128x128xf32, #tpu.memory_space<vmem>>, vector<1x128x128xf32>
    %128 = vector.shape_cast %127 : vector<1x128x128xf32> to vector<128x128xf32>
    %cst_118 = arith.constant dense<0.000000e+00> : vector<8x128xf32>
    %129 = tpu.matmul %126, %128, %cst_118 {dimension_numbers = #tpu.dot_dimension_numbers<[1], [0], [0], [1], [0, 0, 1, 1], [], []>} : vector<8x128xf32>, vector<128x128xf32>, vector<8x128xf32> -> vector<8x128xf32>
    %c2_119 = arith.constant 2 : index
    %c0_120 = arith.constant 0 : index
    %c0_121 = arith.constant 0 : index
    %130 = vector.load %arg5[%c2_119, %c0_120, %c0_121] : memref<3x1x128xf32, #tpu.memory_space<vmem>>, vector<1x1x128xf32>
    %131 = vector.shape_cast %130 : vector<1x1x128xf32> to vector<1x128xf32>
    %132 = vector.broadcast %131 : vector<1x128xf32> to vector<8x128xf32>
    %133 = arith.addf %129, %132 : vector<8x128xf32>
    %cst_122 = arith.constant 0.000000e+00 : f32
    %134 = vector.broadcast %cst_122 : f32 to vector<8x128xf32>
    %135 = arith.maximumf %133, %134 : vector<8x128xf32>
    %c2_123 = arith.constant 2 : index
    %c0_124 = arith.constant 0 : index
    %c0_125 = arith.constant 0 : index
    %136 = vector.load %arg6[%c2_123, %c0_124, %c0_125] : memref<3x128x128xf32, #tpu.memory_space<vmem>>, vector<1x128x128xf32>
    %137 = vector.shape_cast %136 : vector<1x128x128xf32> to vector<128x128xf32>
    %cst_126 = arith.constant dense<0.000000e+00> : vector<8x128xf32>
    %138 = tpu.matmul %135, %137, %cst_126 {dimension_numbers = #tpu.dot_dimension_numbers<[1], [0], [0], [1], [0, 0, 1, 1], [], []>} : vector<8x128xf32>, vector<128x128xf32>, vector<8x128xf32> -> vector<8x128xf32>
    %c2_127 = arith.constant 2 : index
    %c0_128 = arith.constant 0 : index
    %c0_129 = arith.constant 0 : index
    %139 = vector.load %arg7[%c2_127, %c0_128, %c0_129] : memref<3x1x128xf32, #tpu.memory_space<vmem>>, vector<1x1x128xf32>
    %140 = vector.shape_cast %139 : vector<1x1x128xf32> to vector<1x128xf32>
    %141 = vector.broadcast %140 : vector<1x128xf32> to vector<8x128xf32>
    %142 = arith.addf %138, %141 : vector<8x128xf32>
    %cst_130 = arith.constant 0.000000e+00 : f32
    %143 = vector.broadcast %cst_130 : f32 to vector<8x128xf32>
    %144 = arith.maximumf %142, %143 : vector<8x128xf32>
    %c2_131 = arith.constant 2 : index
    %c0_132 = arith.constant 0 : index
    %c0_133 = arith.constant 0 : index
    %145 = vector.load %arg8[%c2_131, %c0_132, %c0_133] : memref<3x128x128xf32, #tpu.memory_space<vmem>>, vector<1x128x128xf32>
    %146 = vector.shape_cast %145 : vector<1x128x128xf32> to vector<128x128xf32>
    %cst_134 = arith.constant dense<0.000000e+00> : vector<8x128xf32>
    %147 = tpu.matmul %144, %146, %cst_134 {dimension_numbers = #tpu.dot_dimension_numbers<[1], [0], [0], [1], [0, 0, 1, 1], [], []>} : vector<8x128xf32>, vector<128x128xf32>, vector<8x128xf32> -> vector<8x128xf32>
    %c2_135 = arith.constant 2 : index
    %c0_136 = arith.constant 0 : index
    %c0_137 = arith.constant 0 : index
    %148 = vector.load %arg9[%c2_135, %c0_136, %c0_137] : memref<3x1x128xf32, #tpu.memory_space<vmem>>, vector<1x1x128xf32>
    %149 = vector.shape_cast %148 : vector<1x1x128xf32> to vector<1x128xf32>
    %150 = vector.broadcast %149 : vector<1x128xf32> to vector<8x128xf32>
    %151 = arith.addf %147, %150 : vector<8x128xf32>
    %cst_138 = arith.constant 0.000000e+00 : f32
    %152 = vector.broadcast %cst_138 : f32 to vector<8x128xf32>
    %153 = arith.maximumf %151, %152 : vector<8x128xf32>
    %c2_139 = arith.constant 2 : index
    %c0_140 = arith.constant 0 : index
    %c0_141 = arith.constant 0 : index
    %154 = vector.load %arg10[%c2_139, %c0_140, %c0_141] : memref<3x128x128xf32, #tpu.memory_space<vmem>>, vector<1x128x128xf32>
    %155 = vector.shape_cast %154 : vector<1x128x128xf32> to vector<128x128xf32>
    %cst_142 = arith.constant dense<0.000000e+00> : vector<8x128xf32>
    %156 = tpu.matmul %153, %155, %cst_142 {dimension_numbers = #tpu.dot_dimension_numbers<[1], [0], [0], [1], [0, 0, 1, 1], [], []>} : vector<8x128xf32>, vector<128x128xf32>, vector<8x128xf32> -> vector<8x128xf32>
    %c2_143 = arith.constant 2 : index
    %c0_144 = arith.constant 0 : index
    %c0_145 = arith.constant 0 : index
    %157 = vector.load %arg11[%c2_143, %c0_144, %c0_145] : memref<3x128x128xf32, #tpu.memory_space<vmem>>, vector<1x128x128xf32>
    %158 = vector.shape_cast %157 : vector<1x128x128xf32> to vector<128x128xf32>
    %cst_146 = arith.constant dense<0.000000e+00> : vector<8x128xf32>
    %159 = tpu.matmul %153, %158, %cst_146 {dimension_numbers = #tpu.dot_dimension_numbers<[1], [0], [0], [1], [0, 0, 1, 1], [], []>} : vector<8x128xf32>, vector<128x128xf32>, vector<8x128xf32> -> vector<8x128xf32>
    %c2_147 = arith.constant 2 : index
    %c0_148 = arith.constant 0 : index
    %c0_149 = arith.constant 0 : index
    %160 = vector.load %arg12[%c2_147, %c0_148, %c0_149] : memref<3x128x128xf32, #tpu.memory_space<vmem>>, vector<1x128x128xf32>
    %161 = vector.shape_cast %160 : vector<1x128x128xf32> to vector<128x128xf32>
    %cst_150 = arith.constant dense<0.000000e+00> : vector<8x128xf32>
    %162 = tpu.matmul %156, %161, %cst_150 {dimension_numbers = #tpu.dot_dimension_numbers<[1], [0], [0], [1], [0, 0, 1, 1], [], []>} : vector<8x128xf32>, vector<128x128xf32>, vector<8x128xf32> -> vector<8x128xf32>
    %c2_151 = arith.constant 2 : index
    %c0_152 = arith.constant 0 : index
    %c0_153 = arith.constant 0 : index
    %163 = vector.load %arg13[%c2_151, %c0_152, %c0_153] : memref<3x1x128xf32, #tpu.memory_space<vmem>>, vector<1x1x128xf32>
    %164 = vector.shape_cast %163 : vector<1x1x128xf32> to vector<1x128xf32>
    %165 = vector.broadcast %164 : vector<1x128xf32> to vector<8x128xf32>
    %166 = arith.addf %162, %165 : vector<8x128xf32>
    %c2_154 = arith.constant 2 : index
    %c0_155 = arith.constant 0 : index
    %c0_156 = arith.constant 0 : index
    %167 = vector.load %arg14[%c2_154, %c0_155, %c0_156] : memref<3x128x128xf32, #tpu.memory_space<vmem>>, vector<1x128x128xf32>
    %168 = vector.shape_cast %167 : vector<1x128x128xf32> to vector<128x128xf32>
    %cst_157 = arith.constant dense<0.000000e+00> : vector<8x128xf32>
    %169 = tpu.matmul %159, %168, %cst_157 {dimension_numbers = #tpu.dot_dimension_numbers<[1], [0], [0], [1], [0, 0, 1, 1], [], []>} : vector<8x128xf32>, vector<128x128xf32>, vector<8x128xf32> -> vector<8x128xf32>
    %c2_158 = arith.constant 2 : index
    %c0_159 = arith.constant 0 : index
    %c0_160 = arith.constant 0 : index
    %170 = vector.load %arg15[%c2_158, %c0_159, %c0_160] : memref<3x1x128xf32, #tpu.memory_space<vmem>>, vector<1x1x128xf32>
    %171 = vector.shape_cast %170 : vector<1x1x128xf32> to vector<1x128xf32>
    %172 = vector.broadcast %171 : vector<1x128xf32> to vector<8x128xf32>
    %173 = arith.addf %169, %172 : vector<8x128xf32>
    %174 = arith.subf %116, %166 : vector<8x128xf32>
    %175 = arith.addf %117, %173 : vector<8x128xf32>
    %c0_161 = arith.constant 0 : index
    %c0_162 = arith.constant 0 : index
    %176 = vector.load %arg16[%c0_161, %c0_162] : memref<8x128xf32, #tpu.memory_space<vmem>>, vector<8x128xf32>
    tpu.vector_store %arg16[%c0_161, %c0_162], %174 {strides = array<i32>} : memref<8x128xf32, #tpu.memory_space<vmem>>, vector<8x128xf32>,
    %c0_163 = arith.constant 0 : index
    %c0_164 = arith.constant 0 : index
    %177 = vector.load %arg17[%c0_163, %c0_164] : memref<8x128xf32, #tpu.memory_space<vmem>>, vector<8x128xf32>
    tpu.vector_store %arg17[%c0_163, %c0_164], %175 {strides = array<i32>} : memref<8x128xf32, #tpu.memory_space<vmem>>, vector<8x128xf32>,
    return
  }
  func.func @transform_0(%arg0: i32) -> (i32, i32) {
    %c0_i32 = arith.constant 0 : i32
    %c0_i32_0 = arith.constant 0 : i32
    return %arg0, %c0_i32 : i32, i32
  }
  func.func @transform_1(%arg0: i32) -> (i32, i32, i32) {
    %c0_i32 = arith.constant 0 : i32
    %c0_i32_0 = arith.constant 0 : i32
    %c0_i32_1 = arith.constant 0 : i32
    %c0_i32_2 = arith.constant 0 : i32
    return %c0_i32, %c0_i32_0, %c0_i32_1 : i32, i32, i32
  }
  func.func @transform_2(%arg0: i32) -> (i32, i32, i32) {
    %c0_i32 = arith.constant 0 : i32
    %c0_i32_0 = arith.constant 0 : i32
    %c0_i32_1 = arith.constant 0 : i32
    %c0_i32_2 = arith.constant 0 : i32
    return %c0_i32, %c0_i32_0, %c0_i32_1 : i32, i32, i32
  }
  func.func @transform_3(%arg0: i32) -> (i32, i32, i32) {
    %c0_i32 = arith.constant 0 : i32
    %c0_i32_0 = arith.constant 0 : i32
    %c0_i32_1 = arith.constant 0 : i32
    %c0_i32_2 = arith.constant 0 : i32
    return %c0_i32, %c0_i32_0, %c0_i32_1 : i32, i32, i32
  }
  func.func @transform_4(%arg0: i32) -> (i32, i32, i32) {
    %c0_i32 = arith.constant 0 : i32
    %c0_i32_0 = arith.constant 0 : i32
    %c0_i32_1 = arith.constant 0 : i32
    %c0_i32_2 = arith.constant 0 : i32
    return %c0_i32, %c0_i32_0, %c0_i32_1 : i32, i32, i32
  }
  func.func @transform_5(%arg0: i32) -> (i32, i32, i32) {
    %c0_i32 = arith.constant 0 : i32
    %c0_i32_0 = arith.constant 0 : i32
    %c0_i32_1 = arith.constant 0 : i32
    %c0_i32_2 = arith.constant 0 : i32
    return %c0_i32, %c0_i32_0, %c0_i32_1 : i32, i32, i32
  }
  func.func @transform_6(%arg0: i32) -> (i32, i32, i32) {
    %c0_i32 = arith.constant 0 : i32
    %c0_i32_0 = arith.constant 0 : i32
    %c0_i32_1 = arith.constant 0 : i32
    %c0_i32_2 = arith.constant 0 : i32
    return %c0_i32, %c0_i32_0, %c0_i32_1 : i32, i32, i32
  }
  func.func @transform_7(%arg0: i32) -> (i32, i32, i32) {
    %c0_i32 = arith.constant 0 : i32
    %c0_i32_0 = arith.constant 0 : i32
    %c0_i32_1 = arith.constant 0 : i32
    %c0_i32_2 = arith.constant 0 : i32
    return %c0_i32, %c0_i32_0, %c0_i32_1 : i32, i32, i32
  }
  func.func @transform_8(%arg0: i32) -> (i32, i32, i32) {
    %c0_i32 = arith.constant 0 : i32
    %c0_i32_0 = arith.constant 0 : i32
    %c0_i32_1 = arith.constant 0 : i32
    %c0_i32_2 = arith.constant 0 : i32
    return %c0_i32, %c0_i32_0, %c0_i32_1 : i32, i32, i32
  }
  func.func @transform_9(%arg0: i32) -> (i32, i32, i32) {
    %c0_i32 = arith.constant 0 : i32
    %c0_i32_0 = arith.constant 0 : i32
    %c0_i32_1 = arith.constant 0 : i32
    %c0_i32_2 = arith.constant 0 : i32
    return %c0_i32, %c0_i32_0, %c0_i32_1 : i32, i32, i32
  }
  func.func @transform_10(%arg0: i32) -> (i32, i32, i32) {
    %c0_i32 = arith.constant 0 : i32
    %c0_i32_0 = arith.constant 0 : i32
    %c0_i32_1 = arith.constant 0 : i32
    %c0_i32_2 = arith.constant 0 : i32
    return %c0_i32, %c0_i32_0, %c0_i32_1 : i32, i32, i32
  }
  func.func @transform_11(%arg0: i32) -> (i32, i32, i32) {
    %c0_i32 = arith.constant 0 : i32
    %c0_i32_0 = arith.constant 0 : i32
    %c0_i32_1 = arith.constant 0 : i32
    %c0_i32_2 = arith.constant 0 : i32
    return %c0_i32, %c0_i32_0, %c0_i32_1 : i32, i32, i32
  }
  func.func @transform_12(%arg0: i32) -> (i32, i32, i32) {
    %c0_i32 = arith.constant 0 : i32
    %c0_i32_0 = arith.constant 0 : i32
    %c0_i32_1 = arith.constant 0 : i32
    %c0_i32_2 = arith.constant 0 : i32
    return %c0_i32, %c0_i32_0, %c0_i32_1 : i32, i32, i32
  }
  func.func @transform_13(%arg0: i32) -> (i32, i32, i32) {
    %c0_i32 = arith.constant 0 : i32
    %c0_i32_0 = arith.constant 0 : i32
    %c0_i32_1 = arith.constant 0 : i32
    %c0_i32_2 = arith.constant 0 : i32
    return %c0_i32, %c0_i32_0, %c0_i32_1 : i32, i32, i32
  }
  func.func @transform_14(%arg0: i32) -> (i32, i32, i32) {
    %c0_i32 = arith.constant 0 : i32
    %c0_i32_0 = arith.constant 0 : i32
    %c0_i32_1 = arith.constant 0 : i32
    %c0_i32_2 = arith.constant 0 : i32
    return %c0_i32, %c0_i32_0, %c0_i32_1 : i32, i32, i32
  }
  func.func @transform_15(%arg0: i32) -> (i32, i32) {
    %c0_i32 = arith.constant 0 : i32
    %c0_i32_0 = arith.constant 0 : i32
    return %arg0, %c0_i32 : i32, i32
  }
  func.func @transform_16(%arg0: i32) -> (i32, i32) {
    %c0_i32 = arith.constant 0 : i32
    %c0_i32_0 = arith.constant 0 : i32
    return %arg0, %c0_i32 : i32, i32
  }
}

</mosaic_0001>

<bundles_post_ra>
// kernel: tpu_custom_call.1
= control target key start
LH: loop header
LB: loop body
LE: loop exit
PB: predicated region body
PF: predicated region fallthrough
CT: control target
= control target key end

     0   :  { %s4634_s0 = inlined_call_operand.hbm [shape: f32[8,128], index: 0, kind: input, shape index: {}, may-alias: {0,15}]   ;;  %s4635_s1 = inlined_call_operand.hbm [shape: f32[3,128,128], index: 1, kind: input, shape index: {}]   ;;  %s4636_s2 = inlined_call_operand.vmem [shape: f32[3,1,128], index: 2, kind: input, shape index: {}]   ;;  %s4637_s3 = inlined_call_operand.hbm [shape: f32[3,128,128], index: 3, kind: input, shape index: {}]   ;;  %s4638_s4 = inlined_call_operand.vmem [shape: f32[3,1,128], index: 4, kind: input, shape index: {}]   ;;  %s4639_s5 = inlined_call_operand.hbm [shape: f32[3,128,128], index: 5, kind: input, shape index: {}]   ;;  %s4640_s6 = inlined_call_operand.vmem [shape: f32[3,1,128], index: 6, kind: input, shape index: {}]   ;;  %s4641_s7 = inlined_call_operand.hbm [shape: f32[3,128,128], index: 7, kind: input, shape index: {}]   ;;  %s4642_s8 = inlined_call_operand.vmem [shape: f32[3,1,128], index: 8, kind: input, shape index: {}]   ;;  %s4643_s9 = inlined_call_operand.hbm [shape: f32[3,128,128], index: 9, kind: input, shape index: {}]   ;;  %s4644_s10 = inlined_call_operand.hbm [shape: f32[3,128,128], index: 10, kind: input, shape index: {}]   ;;  %s4645_s11 = inlined_call_operand.hbm [shape: f32[3,128,128], index: 11, kind: input, shape index: {}]   ;;  %s4646_s12 = inlined_call_operand.vmem [shape: f32[3,1,128], index: 12, kind: input, shape index: {}]   ;;  %s4647_s13 = inlined_call_operand.hbm [shape: f32[3,128,128], index: 13, kind: input, shape index: {}]   ;;  %s4648_s14 = inlined_call_operand.vmem [shape: f32[3,1,128], index: 14, kind: input, shape index: {}]   ;;  %s4649_s15 = inlined_call_operand.hbm [shape: f32[8,128], index: 15, kind: output, shape index: {0}, may-alias: {0,15}]   ;;  %s4650_s16 = inlined_call_operand.hbm [shape: f32[8,128], index: 16, kind: output, shape index: {1}]  }
   0x1   :  { %4651 = sst [smem:[#allocation27_spill]] %s4634_s0 }
   0x2   :  { %22 = vsyncpa [#allocation3], 0 }
   0x3   :  { %23 = vsyncpa [#allocation6], 0 }
   0x4   :  { %24 = vsyncpa [#allocation9], 0 }
   0x5   :  { %25 = vsyncpa [#allocation12], 0 }
   0x6   :  { %26 = vsyncpa [#allocation15], 0 }
   0x7   :  { %27 = vsyncpa [#allocation4], 0 }
   0x8   :  { %28 = vsyncpa [#allocation19], 0  ;;  %s3973_s21 = smov [#allocation5]  }
   0x9   :  { %s44_s22 = sshll.u32 %s3973_s21, 4  ;;  %s45_s22 = int_to_ptr.vmem [resolvable:$true] %s44_s22 }
   0xa   :  { %s3747_s23 = scalar_lea.vmem %s45_s22, 6144  ;;  %p3752_p1 = scmp.lt.s32.totalorder %s45_s22, %s45_s22 }
   0xb   :  { %p3748_p0 = scmp.ne.s32.totalorder %s45_s22, %s3747_s23  ;;  %p3753_p2 = scmp.lt.s32.totalorder %s3747_s23, %s3747_s23 }
   0xd   :  { %p3754_p3 = por %p3753_p2, %p3752_p1 }
   0xf   :  { %p3755_p4 = pnand %p3754_p3, %p3748_p0 }
  0x11   :  { %3758 = shalt.err (!%p3755_p4)
}
  0x12   :  { %s3974_s24 = smov 128   ;;  %s3975_s25 = smov 8  }
  0x13   :  { %50 = dma.hbm_to_vmem [thread:$0]  %s4635_s1, 6144, %s45_s22, [#allocation6], %s3974_s24, %s3974_s24, %s3975_s25  }
  0x14   :  { %s3976_s28 = smov [#allocation8]   ;;  %s3977_s30 = smov [#allocation11]  }
  0x15   :  { %s72_s29 = sshll.u32 %s3976_s28, 4  ;;  %s100_s0 = sshll.u32 %s3977_s30, 4  ;;  %s73_s29 = int_to_ptr.vmem [resolvable:$true] %s72_s29  ;;  %s101_s0 = int_to_ptr.vmem [resolvable:$true] %s100_s0 }
  0x16   :  { %s3767_s17 = scalar_lea.vmem %s73_s29, 6144  ;;  %p3772_p6 = scmp.lt.s32.totalorder %s73_s29, %s73_s29 }
  0x17   :  { %p3768_p5 = scmp.ne.s32.totalorder %s73_s29, %s3767_s17  ;;  %p3773_p7 = scmp.lt.s32.totalorder %s3767_s17, %s3767_s17 }
  0x19   :  { %p3774_p8 = por %p3773_p7, %p3772_p6 }
  0x1b   :  { %p3775_p9 = pnand %p3774_p8, %p3768_p5 }
  0x1d   :  { %3778 = shalt.err (!%p3775_p9)
}
  0x1e   :  { %78 = dma.hbm_to_vmem [thread:$0]  %s4639_s5, 6144, %s73_s29, [#allocation9], %s3974_s24, %s3974_s24, %s3975_s25  }
  0x1f   :  { %s3787_s1 = scalar_lea.vmem %s101_s0, 6144  ;;  %p3792_p11 = scmp.lt.s32.totalorder %s101_s0, %s101_s0 }
  0x20   :  { %p3788_p10 = scmp.ne.s32.totalorder %s101_s0, %s3787_s1  ;;  %p3793_p12 = scmp.lt.s32.totalorder %s3787_s1, %s3787_s1 }
  0x22   :  { %p3794_p13 = por %p3793_p12, %p3792_p11 }
  0x24   :  { %p3795_p0 = pnand %p3794_p13, %p3788_p10 }
  0x26   :  { %3798 = shalt.err (!%p3795_p0)
}
  0x27   :  { %106 = dma.hbm_to_vmem [thread:$0]  %s4643_s9, 6144, %s101_s0, [#allocation12], %s3974_s24, %s3974_s24, %s3975_s25  }
  0x28   :  { %s3978_s22 = smov [#allocation14]   ;;  %s3979_s26 = smov [#allocation2]  }
  0x29   :  { %s124_s23 = sshll.u32 %s3978_s22, 4  ;;  %s35_s5 = sshll.u32 %s3979_s26, 4  ;;  %s125_s23 = int_to_ptr.vmem [resolvable:$true] %s124_s23  ;;  %s36_s5 = int_to_ptr.vmem [resolvable:$true] %s35_s5 }
  0x2a   :  { %s3807_s27 = scalar_lea.vmem %s125_s23, 6144  ;;  %p3812_p2 = scmp.lt.s32.totalorder %s125_s23, %s125_s23 }
  0x2b   :  { %p3808_p1 = scmp.ne.s32.totalorder %s125_s23, %s3807_s27  ;;  %p3813_p3 = scmp.lt.s32.totalorder %s3807_s27, %s3807_s27 }
  0x2d   :  { %p3814_p4 = por %p3813_p3, %p3812_p2 }
  0x2f   :  { %p3815_p5 = pnand %p3814_p4, %p3808_p1 }
  0x31   :  { %3818 = shalt.err (!%p3815_p5)
}
  0x32   :  { %130 = dma.hbm_to_vmem [thread:$0]  %s4645_s11, 6144, %s125_s23, [#allocation15], %s3974_s24, %s3974_s24, %s3975_s25  }
  0x33   :  { %s3827_s9 = scalar_lea.vmem %s36_s5, 128  ;;  %p3832_p7 = scmp.lt.s32.totalorder %s36_s5, %s36_s5 }
  0x34   :  { %p3828_p6 = scmp.ne.s32.totalorder %s36_s5, %s3827_s9  ;;  %p3833_p8 = scmp.lt.s32.totalorder %s3827_s9, %s3827_s9 }
  0x36   :  { %p3834_p9 = por %p3833_p8, %p3832_p7 }
  0x38   :  { %p3835_p10 = pnand %p3834_p9, %p3828_p6 }
  0x3a   :  { %3838 = shalt.err (!%p3835_p10)
}
  0x3b   :  { %s4652_s17 = sld [smem:[#allocation27_spill]]  ;;  %s3980_s18 = smov [#allocation7]  }
  0x3c   :  { %s58_s19 = sshll.u32 %s3980_s18, 4  ;;  %s3981_s1 = smov [#allocation10]   ;;  %s59_s19 = int_to_ptr.vmem [resolvable:$true] %s58_s19 }
  0x3d   :  { %s86_s20 = sshll.u32 %s3981_s1, 4  ;;  %s3847_s21 = scalar_lea.vmem %s59_s19, 6144  ;;  %s87_s20 = int_to_ptr.vmem [resolvable:$true] %s86_s20 }
  0x3e   :  { %p3848_p11 = scmp.ne.s32.totalorder %s59_s19, %s3847_s21  ;;  %p3852_p12 = scmp.lt.s32.totalorder %s59_s19, %s59_s19 }
  0x3f   :  { %p3853_p13 = scmp.lt.s32.totalorder %s3847_s21, %s3847_s21 }
  0x41   :  { %38 = dma.hbm_to_vmem [thread:$0]  %s4652_s17, 128, %s36_s5, [#allocation3]  }
  0x42   :  { %p3854_p0 = por %p3853_p13, %p3852_p12 }
  0x44   :  { %p3855_p1 = pnand %p3854_p0, %p3848_p11 }
  0x46   :  { %3858 = shalt.err (!%p3855_p1)
}
  0x47   :  { %64 = dma.hbm_to_vmem [thread:$0]  %s4637_s3, 6144, %s59_s19, [#allocation6], %s3974_s24, %s3974_s24, %s3975_s25  }
  0x48   :  { %s3867_s23 = scalar_lea.vmem %s87_s20, 6144  ;;  %p3872_p3 = scmp.lt.s32.totalorder %s87_s20, %s87_s20 }
  0x49   :  { %p3868_p2 = scmp.ne.s32.totalorder %s87_s20, %s3867_s23  ;;  %p3873_p4 = scmp.lt.s32.totalorder %s3867_s23, %s3867_s23 }
  0x4b   :  { %p3874_p5 = por %p3873_p4, %p3872_p3 }
  0x4d   :  { %p3875_p6 = pnand %p3874_p5, %p3868_p2 }
  0x4f   :  { %3878 = shalt.err (!%p3875_p6)
}
  0x50   :  { %92 = dma.hbm_to_vmem [thread:$0]  %s4641_s7, 6144, %s87_s20, [#allocation9], %s3974_s24, %s3974_s24, %s3975_s25  }
  0x51   :  { %s3982_s27 = smov [#allocation13]   ;;  %s3983_s29 = smov [#allocation16]  }
  0x52   :  { %s112_s28 = sshll.u32 %s3982_s27, 4  ;;  %s138_s3 = sshll.u32 %s3983_s29, 4  ;;  %s113_s28 = int_to_ptr.vmem [resolvable:$true] %s112_s28  ;;  %s139_s3 = int_to_ptr.vmem [resolvable:$true] %s138_s3 }
  0x53   :  { %s3887_s9 = scalar_lea.vmem %s113_s28, 6144  ;;  %p3892_p8 = scmp.lt.s32.totalorder %s113_s28, %s113_s28 }
  0x54   :  { %p3888_p7 = scmp.ne.s32.totalorder %s113_s28, %s3887_s9  ;;  %p3893_p9 = scmp.lt.s32.totalorder %s3887_s9, %s3887_s9 }
  0x56   :  { %p3894_p10 = por %p3893_p9, %p3892_p8 }
  0x58   :  { %p3895_p11 = pnand %p3894_p10, %p3888_p7 }
  0x5a   :  { %3898 = shalt.err (!%p3895_p11)
}
  0x5b   :  { %118 = dma.hbm_to_vmem [thread:$0]  %s4644_s10, 6144, %s113_s28, [#allocation12], %s3974_s24, %s3974_s24, %s3975_s25  }
  0x5c   :  { %s3907_s7 = scalar_lea.vmem %s139_s3, 6144  ;;  %p3912_p13 = scmp.lt.s32.totalorder %s139_s3, %s139_s3 }
  0x5d   :  { %p3908_p12 = scmp.ne.s32.totalorder %s139_s3, %s3907_s7  ;;  %p3913_p0 = scmp.lt.s32.totalorder %s3907_s7, %s3907_s7 }
  0x5f   :  { %p3914_p1 = por %p3913_p0, %p3912_p13 }
  0x61   :  { %p3915_p2 = pnand %p3914_p1, %p3908_p12 }
  0x63   :  { %3918 = shalt.err (!%p3915_p2)
}
  0x64   :  { %144 = dma.hbm_to_vmem [thread:$0]  %s4647_s13, 6144, %s139_s3, [#allocation15], %s3974_s24, %s3974_s24, %s3975_s25  }
  0x65   :  { %3959 = dma.done.wait [#allocation3], 128  }
  0x66   :  { %3960 = vsyncadd [#allocation3], 4294967168 }
  0x67   :  { %3961 = dma.done.wait [#allocation6], 12288  }
  0x68   :  { %3962 = vsyncadd [#allocation6], 4294955008 }
  0x69   :  { %3963 = dma.done.wait [#allocation9], 12288  }
  0x6a   :  { %3964 = vsyncadd [#allocation9], 4294955008 }
  0x6b   :  { %3965 = dma.done.wait [#allocation12], 12288  }
  0x6c   :  { %3966 = vsyncadd [#allocation12], 4294955008 }
  0x6d   :  { %3967 = dma.done.wait [#allocation15], 12288  }
  0x6e   :  { %3968 = vsyncadd [#allocation15], 4294955008  ;;  %v3984_v0 = vmov 0.0   ;;  %vm3985_vm0 = vmmov 0   ;;  %v190_v1 = vld [vmem:[#allocation5 + $0x78] sm:$0xff]  ;;  %v189_v2 = vld [vmem:[#allocation5 + $0x70] sm:$0xff] }
  0x6f   :  { %2884 = vmatprep.subr.mxu0 %v3984_v0  ;;  %2916 = vmatprep.mubr.msk.f32.mxu0 %vm3985_vm0, %v3984_v0  ;;  %v188_v3 = vld [vmem:[#allocation5 + $0x68] sm:$0xff]  ;;  %v187_v4 = vld [vmem:[#allocation5 + $0x60] sm:$0xff]  ;;  %v284_v5 = vld [vmem:[#allocation7 + $0x78] sm:$0xff]  ;;  %s3986_s22 = smov [#allocation17]   ;;  %s3987_s26 = smov [#allocation18]  }
  0x70   :  { %2919 = vmatprep.subr.mxu1 %v3984_v0  ;;  %2951 = vmatprep.mubr.msk.f32.mxu1 %vm3985_vm0, %v3984_v0  ;;  %v186_v6 = vld [vmem:[#allocation5 + $0x58] sm:$0xff]  ;;  %v283_v7 = vld [vmem:[#allocation7 + $0x70] sm:$0xff]  ;;  %v282_v8 = vld [vmem:[#allocation7 + $0x68] sm:$0xff]  ;;  %s2419_s23 = sshll.u32 %s3986_s22, 4  ;;  %s2429_s5 = sshll.u32 %s3987_s26, 4  ;;  %s2420_s23 = int_to_ptr.vmem [resolvable:$true] %s2419_s23  ;;  %s2430_s5 = int_to_ptr.vmem [resolvable:$true] %s2429_s5 }
  0x71   :  { %2885 = vmatpush3.msra.mxu0 %v190_v1  ;;  %2920 = vmatpush3.msra.mxu1 %v284_v5  ;;  %v185_v9 = vld [vmem:[#allocation5 + $0x50] sm:$0xff]  ;;  %v281_v10 = vld [vmem:[#allocation7 + $0x60] sm:$0xff]  ;;  %v184_v11 = vld [vmem:[#allocation5 + $0x48] sm:$0xff]  ;;  %p3924_p4 = scmp.lt.s32.totalorder %s2420_s23, %s2420_s23 }
  0x72   :  { %2886 = vmatprep.subr.mxu0 %v3984_v0  ;;  %2921 = vmatprep.subr.mxu1 %v3984_v0  ;;  %v280_v12 = vld [vmem:[#allocation7 + $0x58] sm:$0xff]  ;;  %v183_v13 = vld [vmem:[#allocation5 + $0x40] sm:$0xff]  ;;  %v279_v14 = vld [vmem:[#allocation7 + $0x50] sm:$0xff] }
  0x73   :  { %2887 = vmatpush3.msra.mxu0 %v189_v2  ;;  %2922 = vmatpush3.msra.mxu1 %v283_v7  ;;  %v182_v15 = vld [vmem:[#allocation5 + $0x38] sm:$0xff]  ;;  %v278_v16 = vld [vmem:[#allocation7 + $0x48] sm:$0xff]  ;;  %v181_v17 = vld [vmem:[#allocation5 + $0x30] sm:$0xff] }
  0x74   :  { %2888 = vmatprep.subr.mxu0 %v3984_v0  ;;  %2923 = vmatprep.subr.mxu1 %v3984_v0  ;;  %v277_v18 = vld [vmem:[#allocation7 + $0x40] sm:$0xff]  ;;  %v180_v19 = vld [vmem:[#allocation5 + $0x28] sm:$0xff]  ;;  %v276_v20 = vld [vmem:[#allocation7 + $0x38] sm:$0xff] }
  0x75   :  { %2889 = vmatpush3.msra.mxu0 %v188_v3  ;;  %2924 = vmatpush3.msra.mxu1 %v282_v8  ;;  %v179_v21 = vld [vmem:[#allocation5 + $0x20] sm:$0xff]  ;;  %v275_v22 = vld [vmem:[#allocation7 + $0x30] sm:$0xff]  ;;  %v178_v23 = vld [vmem:[#allocation5 + $0x18] sm:$0xff] }
  0x76   :  { %2890 = vmatprep.subr.mxu0 %v3984_v0  ;;  %2925 = vmatprep.subr.mxu1 %v3984_v0  ;;  %v274_v24 = vld [vmem:[#allocation7 + $0x28] sm:$0xff]  ;;  %v177_v25 = vld [vmem:[#allocation5 + $0x10] sm:$0xff]  ;;  %v273_v26 = vld [vmem:[#allocation7 + $0x20] sm:$0xff] }
  0x77   :  { %2891 = vmatpush3.msra.mxu0 %v187_v4  ;;  %2926 = vmatpush3.msra.mxu1 %v281_v10  ;;  %v176_v27 = vld [vmem:[#allocation5 + $0x8] sm:$0xff]  ;;  %v272_v28 = vld [vmem:[#allocation7 + $0x18] sm:$0xff]  ;;  %v175_v29 = vld [vmem:[#allocation5] sm:$0xff] }
  0x78   :  { %2892 = vmatprep.subr.mxu0 %v3984_v0  ;;  %2927 = vmatprep.subr.mxu1 %v3984_v0  ;;  %v4155_v30 = vld [vmem:[#allocation2] sm:$0xff]  ;;  %v271_v31 = vld [vmem:[#allocation7 + $0x10] sm:$0xff]  ;;  %v270_v32 = vld [vmem:[#allocation7 + $0x8] sm:$0xff] }
  0x79   :  { %2893 = vmatpush3.msra.mxu0 %v186_v6  ;;  %2928 = vmatpush3.msra.mxu1 %v280_v12  ;;  %v269_v33 = vld [vmem:[#allocation7] sm:$0xff]  ;;  %v378_v34 = vld [vmem:[#allocation8 + $0x78] sm:$0xff]  ;;  %v377_v35 = vld [vmem:[#allocation8 + $0x70] sm:$0xff] }
  0x7a   :  { %2894 = vmatprep.subr.mxu0 %v3984_v0  ;;  %2929 = vmatprep.subr.mxu1 %v3984_v0  ;;  %v376_v36 = vld [vmem:[#allocation8 + $0x68] sm:$0xff]  ;;  %v375_v37 = vld [vmem:[#allocation8 + $0x60] sm:$0xff]  ;;  %v374_v38 = vld [vmem:[#allocation8 + $0x58] sm:$0xff] }
  0x7b   :  { %2895 = vmatpush3.msra.mxu0 %v185_v9  ;;  %2930 = vmatpush3.msra.mxu1 %v279_v14  ;;  %v373_v39 = vld [vmem:[#allocation8 + $0x50] sm:$0xff]  ;;  %v372_v40 = vld [vmem:[#allocation8 + $0x48] sm:$0xff]  ;;  %v371_v41 = vld [vmem:[#allocation8 + $0x40] sm:$0xff] }
  0x7c   :  { %2896 = vmatprep.subr.mxu0 %v3984_v0  ;;  %2931 = vmatprep.subr.mxu1 %v3984_v0  ;;  %v370_v42 = vld [vmem:[#allocation8 + $0x38] sm:$0xff]  ;;  %v369_v43 = vld [vmem:[#allocation8 + $0x30] sm:$0xff]  ;;  %v368_v44 = vld [vmem:[#allocation8 + $0x28] sm:$0xff] }
  0x7d   :  { %2897 = vmatpush3.msra.mxu0 %v184_v11  ;;  %2932 = vmatpush3.msra.mxu1 %v278_v16  ;;  %v367_v45 = vld [vmem:[#allocation8 + $0x20] sm:$0xff]  ;;  %v366_v46 = vld [vmem:[#allocation8 + $0x18] sm:$0xff]  ;;  %v365_v52 = vld [vmem:[#allocation8 + $0x10] sm:$0xff] }
  0x7e   :  { %2898 = vmatprep.subr.mxu0 %v3984_v0  ;;  %2933 = vmatprep.subr.mxu1 %v3984_v0  ;;  %v2446_v47 = vld [vmem:[%s4636_s2] ss:$0 sm:$0xff]  ;;  %v364_v53 = vld [vmem:[#allocation8 + $0x8] sm:$0xff]  ;;  %v363_v54 = vld [vmem:[#allocation8] sm:$0xff] }
  0x7f   :  { %2899 = vmatpush3.msra.mxu0 %v183_v13  ;;  %2934 = vmatpush3.msra.mxu1 %v277_v18  ;;  %v472_v55 = vld [vmem:[#allocation10 + $0x78] sm:$0xff]  ;;  %v471_v56 = vld [vmem:[#allocation10 + $0x70] sm:$0xff]  ;;  %v470_v57 = vld [vmem:[#allocation10 + $0x68] sm:$0xff] }
  0x80   :  { %2900 = vmatprep.subr.mxu0 %v3984_v0  ;;  %2935 = vmatprep.subr.mxu1 %v3984_v0  ;;  %v469_v58 = vld [vmem:[#allocation10 + $0x60] sm:$0xff]  ;;  %v468_v59 = vld [vmem:[#allocation10 + $0x58] sm:$0xff]  ;;  %v467_v60 = vld [vmem:[#allocation10 + $0x50] sm:$0xff] }
  0x81   :  { %2901 = vmatpush3.msra.mxu0 %v182_v15  ;;  %2936 = vmatpush3.msra.mxu1 %v276_v20  ;;  %v466_v61 = vld [vmem:[#allocation10 + $0x48] sm:$0xff]  ;;  %v465_v62 = vld [vmem:[#allocation10 + $0x40] sm:$0xff]  ;;  %v464_v63 = vld [vmem:[#allocation10 + $0x38] sm:$0xff] }
  0x82   :  { %2902 = vmatprep.subr.mxu0 %v3984_v0  ;;  %2937 = vmatprep.subr.mxu1 %v3984_v0  ;;  %v463_v1 = vld [vmem:[#allocation10 + $0x30] sm:$0xff]  ;;  %v462_v2 = vld [vmem:[#allocation10 + $0x28] sm:$0xff]  ;;  %v461_v3 = vld [vmem:[#allocation10 + $0x20] sm:$0xff] }
  0x83   :  { %2903 = vmatpush3.msra.mxu0 %v181_v17  ;;  %2938 = vmatpush3.msra.mxu1 %v275_v22  ;;  %v460_v4 = vld [vmem:[#allocation10 + $0x18] sm:$0xff]  ;;  %v459_v10 = vld [vmem:[#allocation10 + $0x10] sm:$0xff]  ;;  %v458_v11 = vld [vmem:[#allocation10 + $0x8] sm:$0xff] }
  0x84   :  { %2904 = vmatprep.subr.mxu0 %v3984_v0  ;;  %2939 = vmatprep.subr.mxu1 %v3984_v0  ;;  %v2447_v5 = vld [vmem:[%s4638_s4] ss:$0 sm:$0xff]  ;;  %v457_v12 = vld [vmem:[#allocation10] sm:$0xff]  ;;  %v565_v14 = vld [vmem:[#allocation11 + $0x70] sm:$0xff] }
  0x85   :  { %2905 = vmatpush3.msra.mxu0 %v180_v19  ;;  %2940 = vmatpush3.msra.mxu1 %v274_v24  ;;  %v566_v13 = vld [vmem:[#allocation11 + $0x78] sm:$0xff]  ;;  %v564_v15 = vld [vmem:[#allocation11 + $0x68] sm:$0xff]  ;;  %v563_v16 = vld [vmem:[#allocation11 + $0x60] sm:$0xff] }
  0x86   :  { %2906 = vmatprep.subr.mxu0 %v3984_v0  ;;  %2941 = vmatprep.subr.mxu1 %v3984_v0  ;;  %v562_v17 = vld [vmem:[#allocation11 + $0x58] sm:$0xff]  ;;  %v561_v18 = vld [vmem:[#allocation11 + $0x50] sm:$0xff]  ;;  %v560_v19 = vld [vmem:[#allocation11 + $0x48] sm:$0xff] }
  0x87   :  { %2907 = vmatpush3.msra.mxu0 %v179_v21  ;;  %2942 = vmatpush3.msra.mxu1 %v273_v26  ;;  %v559_v20 = vld [vmem:[#allocation11 + $0x40] sm:$0xff]  ;;  %v558_v21 = vld [vmem:[#allocation11 + $0x38] sm:$0xff]  ;;  %v557_v22 = vld [vmem:[#allocation11 + $0x30] sm:$0xff] }
  0x88   :  { %2908 = vmatprep.subr.mxu0 %v3984_v0  ;;  %2943 = vmatprep.subr.mxu1 %v3984_v0  ;;  %v555_v24 = vld [vmem:[#allocation11 + $0x20] sm:$0xff]  ;;  %v2448_v26 = vld [vmem:[%s4640_s6] ss:$0 sm:$0xff] }
  0x89   :  { %2909 = vmatpush3.msra.mxu0 %v178_v23  ;;  %2944 = vmatpush3.msra.mxu1 %v272_v28  ;;  %v556_v23 = vld [vmem:[#allocation11 + $0x28] sm:$0xff] }
  0x8a   :  { %2910 = vmatprep.subr.mxu0 %v3984_v0  ;;  %2945 = vmatprep.subr.mxu1 %v3984_v0 }
  0x8b   :  { %2911 = vmatpush3.msra.mxu0 %v177_v25  ;;  %2946 = vmatpush3.msra.mxu1 %v271_v31  ;;  %v554_v25 = vld [vmem:[#allocation11 + $0x18] sm:$0xff] }
  0x8c   :  { %2912 = vmatprep.subr.mxu0 %v3984_v0  ;;  %2947 = vmatprep.subr.mxu1 %v3984_v0 }
  0x8d   :  { %2913 = vmatpush3.msra.mxu0 %v176_v27  ;;  %2948 = vmatpush3.msra.mxu1 %v270_v32  ;;  %v652_v32 = vld [vmem:[#allocation13 + $0x78] sm:$0xff] }
  0x8e   :  { %2914 = vmatprep.subr.mxu0 %v3984_v0  ;;  %2949 = vmatprep.subr.mxu1 %v3984_v0 }
  0x8f   :  { %2915 = vmatpush3.msra.mxu0 %v175_v29  ;;  %2950 = vmatpush3.msra.mxu1 %v269_v33  ;;  %v651_v33 = vld [vmem:[#allocation13 + $0x70] sm:$0xff] }
  0x90   :  { %2917 = vmatmul.mubr.f32.vlgmr.msra.gmra.mxu0 %v4155_v30  ;;  %2954 = vmatprep.subr.mxu0 %v3984_v0 }
  0x91   :  { %2986 = vmatprep.mubr.msk.f32.mxu0 %vm3985_vm0, %v3984_v0  ;;  %2989 = vmatprep.subr.mxu1 %v3984_v0 }
  0x92   :  { %2955 = vmatpush3.msra.mxu0 %v378_v34  ;;  %v650_v34 = vld [vmem:[#allocation13 + $0x68] sm:$0xff] }
  0x93   :  { %2956 = vmatprep.subr.mxu0 %v3984_v0 }
  0x94   :  { %2957 = vmatpush3.msra.mxu0 %v377_v35  ;;  %v649_v35 = vld [vmem:[#allocation13 + $0x60] sm:$0xff] }
  0x95   :  { %2958 = vmatprep.subr.mxu0 %v3984_v0 }
  0x96   :  { %2959 = vmatpush3.msra.mxu0 %v376_v36  ;;  %v648_v36 = vld [vmem:[#allocation13 + $0x58] sm:$0xff] }
  0x97   :  { %2960 = vmatprep.subr.mxu0 %v3984_v0 }
  0x98   :  { %2961 = vmatpush3.msra.mxu0 %v375_v37  ;;  %v647_v37 = vld [vmem:[#allocation13 + $0x50] sm:$0xff] }
  0x99   :  { %2962 = vmatprep.subr.mxu0 %v3984_v0 }
  0x9a   :  { %2963 = vmatpush3.msra.mxu0 %v374_v38  ;;  %v646_v38 = vld [vmem:[#allocation13 + $0x48] sm:$0xff] }
  0x9b   :  { %2964 = vmatprep.subr.mxu0 %v3984_v0 }
  0x9c   :  { %2965 = vmatpush3.msra.mxu0 %v373_v39  ;;  %v645_v39 = vld [vmem:[#allocation13 + $0x40] sm:$0xff] }
  0x9d   :  { %2966 = vmatprep.subr.mxu0 %v3984_v0 }
  0x9e   :  { %2967 = vmatpush3.msra.mxu0 %v372_v40  ;;  %v644_v40 = vld [vmem:[#allocation13 + $0x38] sm:$0xff] }
  0x9f   :  { %2968 = vmatprep.subr.mxu0 %v3984_v0 }
  0xa0   :  { %2969 = vmatpush3.msra.mxu0 %v371_v41  ;;  %v643_v41 = vld [vmem:[#allocation13 + $0x30] sm:$0xff] }
  0xa1   :  { %2970 = vmatprep.subr.mxu0 %v3984_v0 }
  0xa2   :  { %2971 = vmatpush3.msra.mxu0 %v370_v42  ;;  %v642_v42 = vld [vmem:[#allocation13 + $0x28] sm:$0xff] }
  0xa3   :  { %2972 = vmatprep.subr.mxu0 %v3984_v0 }
  0xa4   :  { %2973 = vmatpush3.msra.mxu0 %v369_v43  ;;  %v641_v43 = vld [vmem:[#allocation13 + $0x20] sm:$0xff] }
  0xa5   :  { %2974 = vmatprep.subr.mxu0 %v3984_v0 }
  0xa6   :  { %2975 = vmatpush3.msra.mxu0 %v368_v44  ;;  %v640_v44 = vld [vmem:[#allocation13 + $0x18] sm:$0xff] }
  0xa7   :  { %2976 = vmatprep.subr.mxu0 %v3984_v0 }
  0xa8   :  { %2977 = vmatpush3.msra.mxu0 %v367_v45  ;;  %v553_v45 = vld [vmem:[#allocation11 + $0x10] sm:$0xff] }
  0xa9   :  { %2978 = vmatprep.subr.mxu0 %v3984_v0 }
  0xaa   :  { %2979 = vmatpush3.msra.mxu0 %v366_v46  ;;  %v639_v46 = vld [vmem:[#allocation13 + $0x10] sm:$0xff] }
  0xab   :  { %2980 = vmatprep.subr.mxu0 %v3984_v0 }
  0xac   :  { %2981 = vmatpush3.msra.mxu0 %v365_v52 }
  0xad   :  { %2982 = vmatprep.subr.mxu0 %v3984_v0 }
  0xae   :  { %2983 = vmatpush3.msra.mxu0 %v364_v53 }
  0xaf   :  { %2984 = vmatprep.subr.mxu0 %v3984_v0 }
  0xb0   :  { %2985 = vmatpush3.msra.mxu0 %v363_v54 }
  0xb1   :  { %3024 = vmatprep.subr.mxu0 %v3984_v0 }
 0x150   :  { %v264_v48 = vpop.f32.mrf.mxu0 }
 0x151   :  { %v265_v49 = vadd.f32 %v2446_v47, %v264_v48  ;;  %v552_v47 = vld [vmem:[#allocation11 + $0x8] sm:$0xff] }
 0x152   :  { %v2918_v50 = vpop.f32.mrf.mxu0  ;;  %v638_v48 = vld [vmem:[#allocation13 + $0x8] sm:$0xff] }
 0x153   :  { %v268_v51 = vmax.f32 %v265_v49, 0.0  ;;  %v551_v49 = vld [vmem:[#allocation11] sm:$0xff] }
 0x154   :  { %v637_v50 = vld [vmem:[#allocation13] sm:$0xff] }
 0x155   :  { %2952 = vmatmul.mubr.f32.vlgmr.msra.gmra.mxu1 %v268_v51  ;;  %v2449_v51 = vld [vmem:[%s4642_s8] ss:$0 sm:$0xff] }
 0x156   :  { %3021 = vmatprep.mubr.msk.f32.mxu1 %vm3985_vm0, %v3984_v0  ;;  %2990 = vmatpush3.msra.mxu1 %v472_v55 }
 0x157   :  { %2991 = vmatprep.subr.mxu1 %v3984_v0 }
 0x158   :  { %2992 = vmatpush3.msra.mxu1 %v471_v56  ;;  %v738_v56 = vld [vmem:[#allocation14 + $0x78] sm:$0xff] }
 0x159   :  { %2993 = vmatprep.subr.mxu1 %v3984_v0 }
 0x15a   :  { %2994 = vmatpush3.msra.mxu1 %v470_v57  ;;  %v831_v57 = vld [vmem:[#allocation16 + $0x78] sm:$0xff] }
 0x15b   :  { %2995 = vmatprep.subr.mxu1 %v3984_v0 }
 0x15c   :  { %2996 = vmatpush3.msra.mxu1 %v469_v58  ;;  %v737_v58 = vld [vmem:[#allocation14 + $0x70] sm:$0xff] }
 0x15d   :  { %2997 = vmatprep.subr.mxu1 %v3984_v0 }
 0x15e   :  { %2998 = vmatpush3.msra.mxu1 %v468_v59  ;;  %v830_v59 = vld [vmem:[#allocation16 + $0x70] sm:$0xff] }
 0x15f   :  { %2999 = vmatprep.subr.mxu1 %v3984_v0 }
 0x160   :  { %3000 = vmatpush3.msra.mxu1 %v467_v60  ;;  %v736_v60 = vld [vmem:[#allocation14 + $0x68] sm:$0xff] }
 0x161   :  { %3001 = vmatprep.subr.mxu1 %v3984_v0 }
 0x162   :  { %3002 = vmatpush3.msra.mxu1 %v466_v61  ;;  %v829_v61 = vld [vmem:[#allocation16 + $0x68] sm:$0xff] }
 0x163   :  { %3003 = vmatprep.subr.mxu1 %v3984_v0 }
 0x164   :  { %3004 = vmatpush3.msra.mxu1 %v465_v62  ;;  %v735_v62 = vld [vmem:[#allocation14 + $0x60] sm:$0xff] }
 0x165   :  { %3005 = vmatprep.subr.mxu1 %v3984_v0 }
 0x166   :  { %3006 = vmatpush3.msra.mxu1 %v464_v63  ;;  %v828_v63 = vld [vmem:[#allocation16 + $0x60] sm:$0xff] }
 0x167   :  { %3007 = vmatprep.subr.mxu1 %v3984_v0 }
 0x168   :  { %3008 = vmatpush3.msra.mxu1 %v463_v1  ;;  %v734_v1 = vld [vmem:[#allocation14 + $0x58] sm:$0xff] }
 0x169   :  { %3009 = vmatprep.subr.mxu1 %v3984_v0 }
 0x16a   :  { %3010 = vmatpush3.msra.mxu1 %v462_v2  ;;  %v827_v2 = vld [vmem:[#allocation16 + $0x58] sm:$0xff] }
 0x16b   :  { %3011 = vmatprep.subr.mxu1 %v3984_v0 }
 0x16c   :  { %3012 = vmatpush3.msra.mxu1 %v461_v3  ;;  %v733_v3 = vld [vmem:[#allocation14 + $0x50] sm:$0xff] }
 0x16d   :  { %3013 = vmatprep.subr.mxu1 %v3984_v0 }
 0x16e   :  { %3014 = vmatpush3.msra.mxu1 %v460_v4  ;;  %v826_v4 = vld [vmem:[#allocation16 + $0x50] sm:$0xff] }
 0x16f   :  { %3015 = vmatprep.subr.mxu1 %v3984_v0 }
 0x170   :  { %3016 = vmatpush3.msra.mxu1 %v459_v10  ;;  %v823_v10 = vld [vmem:[#allocation16 + $0x38] sm:$0xff] }
 0x171   :  { %3017 = vmatprep.subr.mxu1 %v3984_v0 }
 0x172   :  { %3018 = vmatpush3.msra.mxu1 %v458_v11  ;;  %v729_v11 = vld [vmem:[#allocation14 + $0x30] sm:$0xff] }
 0x173   :  { %3019 = vmatprep.subr.mxu1 %v3984_v0 }
 0x174   :  { %3020 = vmatpush3.msra.mxu1 %v457_v12  ;;  %v822_v12 = vld [vmem:[#allocation16 + $0x30] sm:$0xff] }
 0x175   :  { %3059 = vmatprep.subr.mxu1 %v3984_v0 }
 0x215   :  { %v358_v6 = vpop.f32.mrf.mxu1 }
 0x216   :  { %v359_v7 = vadd.f32 %v2447_v5, %v358_v6  ;;  %v732_v5 = vld [vmem:[#allocation14 + $0x48] sm:$0xff] }
 0x217   :  { %v2953_v8 = vpop.f32.mrf.mxu1  ;;  %v825_v6 = vld [vmem:[#allocation16 + $0x48] sm:$0xff] }
 0x218   :  { %v362_v9 = vmax.f32 %v359_v7, 0.0  ;;  %v731_v7 = vld [vmem:[#allocation14 + $0x40] sm:$0xff] }
 0x219   :  { %v824_v8 = vld [vmem:[#allocation16 + $0x40] sm:$0xff] }
 0x21a   :  { %2987 = vmatmul.mubr.f32.vlgmr.msra.gmra.mxu0 %v362_v9  ;;  %v730_v9 = vld [vmem:[#allocation14 + $0x38] sm:$0xff] }
 0x21b   :  { %3056 = vmatprep.mubr.msk.f32.mxu0 %vm3985_vm0, %v3984_v0  ;;  %3025 = vmatpush3.msra.mxu0 %v566_v13  ;;  %v728_v13 = vld [vmem:[#allocation14 + $0x28] sm:$0xff] }
 0x21c   :  { %3026 = vmatprep.subr.mxu0 %v3984_v0 }
 0x21d   :  { %3027 = vmatpush3.msra.mxu0 %v565_v14  ;;  %v821_v14 = vld [vmem:[#allocation16 + $0x28] sm:$0xff] }
 0x21e   :  { %3028 = vmatprep.subr.mxu0 %v3984_v0 }
 0x21f   :  { %3029 = vmatpush3.msra.mxu0 %v564_v15  ;;  %v727_v15 = vld [vmem:[#allocation14 + $0x20] sm:$0xff] }
 0x220   :  { %3030 = vmatprep.subr.mxu0 %v3984_v0 }
 0x221   :  { %3031 = vmatpush3.msra.mxu0 %v563_v16  ;;  %v820_v16 = vld [vmem:[#allocation16 + $0x20] sm:$0xff] }
 0x222   :  { %3032 = vmatprep.subr.mxu0 %v3984_v0 }
 0x223   :  { %3033 = vmatpush3.msra.mxu0 %v562_v17  ;;  %v726_v17 = vld [vmem:[#allocation14 + $0x18] sm:$0xff] }
 0x224   :  { %3034 = vmatprep.subr.mxu0 %v3984_v0 }
 0x225   :  { %3035 = vmatpush3.msra.mxu0 %v561_v18  ;;  %v819_v18 = vld [vmem:[#allocation16 + $0x18] sm:$0xff] }
 0x226   :  { %3036 = vmatprep.subr.mxu0 %v3984_v0 }
 0x227   :  { %3037 = vmatpush3.msra.mxu0 %v560_v19  ;;  %v725_v19 = vld [vmem:[#allocation14 + $0x10] sm:$0xff] }
 0x228   :  { %3038 = vmatprep.subr.mxu0 %v3984_v0 }
 0x229   :  { %3039 = vmatpush3.msra.mxu0 %v559_v20  ;;  %v818_v20 = vld [vmem:[#allocation16 + $0x10] sm:$0xff] }
 0x22a   :  { %3040 = vmatprep.subr.mxu0 %v3984_v0 }
 0x22b   :  { %3041 = vmatpush3.msra.mxu0 %v558_v21  ;;  %v724_v21 = vld [vmem:[#allocation14 + $0x8] sm:$0xff] }
 0x22c   :  { %3042 = vmatprep.subr.mxu0 %v3984_v0 }
 0x22d   :  { %3043 = vmatpush3.msra.mxu0 %v557_v22  ;;  %v817_v22 = vld [vmem:[#allocation16 + $0x8] sm:$0xff] }
 0x22e   :  { %3044 = vmatprep.subr.mxu0 %v3984_v0 }
 0x22f   :  { %3045 = vmatpush3.msra.mxu0 %v556_v23  ;;  %v723_v23 = vld [vmem:[#allocation14] sm:$0xff] }
 0x230   :  { %3046 = vmatprep.subr.mxu0 %v3984_v0 }
 0x231   :  { %3047 = vmatpush3.msra.mxu0 %v555_v24  ;;  %v816_v24 = vld [vmem:[#allocation16] sm:$0xff] }
 0x232   :  { %3048 = vmatprep.subr.mxu0 %v3984_v0 }
 0x233   :  { %3049 = vmatpush3.msra.mxu0 %v554_v25  ;;  %v927_v25 = vld [vmem:[#allocation5 + $0xf8] sm:$0xff] }
 0x234   :  { %3050 = vmatprep.subr.mxu0 %v3984_v0 }
 0x235   :  { %3051 = vmatpush3.msra.mxu0 %v553_v45  ;;  %v912_v45 = vld [vmem:[#allocation5 + $0x80] sm:$0xff] }
 0x236   :  { %3052 = vmatprep.subr.mxu0 %v3984_v0 }
 0x237   :  { %3053 = vmatpush3.msra.mxu0 %v552_v47  ;;  %v1022_v47 = vld [vmem:[#allocation7 + $0xf0] sm:$0xff] }
 0x238   :  { %3054 = vmatprep.subr.mxu0 %v3984_v0 }
 0x239   :  { %3055 = vmatpush3.msra.mxu0 %v551_v49  ;;  %v1020_v49 = vld [vmem:[#allocation7 + $0xe0] sm:$0xff] }
 0x23a   :  { %3094 = vmatprep.subr.mxu0 %v3984_v0 }
 0x2da   :  { %v452_v27 = vpop.f32.mrf.mxu0 }
 0x2db   :  { %v453_v28 = vadd.f32 %v2448_v26, %v452_v27 }
 0x2dc   :  { %v2988_v29 = vpop.f32.mrf.mxu0 }
 0x2dd   :  { %v456_v31 = vmax.f32 %v453_v28, 0.0  ;;  %v926_v28 = vld [vmem:[#allocation5 + $0xf0] sm:$0xff] }
 0x2df   :  { %3022 = vmatmul.mubr.f32.vlgmr.msra.gmra.mxu1 %v456_v31 }
 0x2e0   :  { %3060 = vmatpush3.msra.mxu1 %v652_v32  ;;  %3091 = vmatprep.mubr.msk.f32.mxu1 %vm3985_vm0, %v3984_v0  ;;  %v925_v32 = vld [vmem:[#allocation5 + $0xe8] sm:$0xff] }
 0x2e1   :  { %3061 = vmatprep.subr.mxu1 %v3984_v0 }
 0x2e2   :  { %3062 = vmatpush3.msra.mxu1 %v651_v33  ;;  %v924_v33 = vld [vmem:[#allocation5 + $0xe0] sm:$0xff] }
 0x2e3   :  { %3063 = vmatprep.subr.mxu1 %v3984_v0 }
 0x2e4   :  { %3064 = vmatpush3.msra.mxu1 %v650_v34  ;;  %v923_v34 = vld [vmem:[#allocation5 + $0xd8] sm:$0xff] }
 0x2e5   :  { %3065 = vmatprep.subr.mxu1 %v3984_v0 }
 0x2e6   :  { %3066 = vmatpush3.msra.mxu1 %v649_v35  ;;  %v922_v35 = vld [vmem:[#allocation5 + $0xd0] sm:$0xff] }
 0x2e7   :  { %3067 = vmatprep.subr.mxu1 %v3984_v0 }
 0x2e8   :  { %3068 = vmatpush3.msra.mxu1 %v648_v36  ;;  %v921_v36 = vld [vmem:[#allocation5 + $0xc8] sm:$0xff] }
 0x2e9   :  { %3069 = vmatprep.subr.mxu1 %v3984_v0 }
 0x2ea   :  { %3070 = vmatpush3.msra.mxu1 %v647_v37  ;;  %v920_v37 = vld [vmem:[#allocation5 + $0xc0] sm:$0xff] }
 0x2eb   :  { %3071 = vmatprep.subr.mxu1 %v3984_v0 }
 0x2ec   :  { %3072 = vmatpush3.msra.mxu1 %v646_v38  ;;  %v919_v38 = vld [vmem:[#allocation5 + $0xb8] sm:$0xff] }
 0x2ed   :  { %3073 = vmatprep.subr.mxu1 %v3984_v0 }
 0x2ee   :  { %3074 = vmatpush3.msra.mxu1 %v645_v39  ;;  %v918_v39 = vld [vmem:[#allocation5 + $0xb0] sm:$0xff] }
 0x2ef   :  { %3075 = vmatprep.subr.mxu1 %v3984_v0 }
 0x2f0   :  { %3076 = vmatpush3.msra.mxu1 %v644_v40  ;;  %v917_v40 = vld [vmem:[#allocation5 + $0xa8] sm:$0xff] }
 0x2f1   :  { %3077 = vmatprep.subr.mxu1 %v3984_v0 }
 0x2f2   :  { %3078 = vmatpush3.msra.mxu1 %v643_v41  ;;  %v916_v41 = vld [vmem:[#allocation5 + $0xa0] sm:$0xff] }
 0x2f3   :  { %3079 = vmatprep.subr.mxu1 %v3984_v0 }
 0x2f4   :  { %3080 = vmatpush3.msra.mxu1 %v642_v42  ;;  %v915_v42 = vld [vmem:[#allocation5 + $0x98] sm:$0xff] }
 0x2f5   :  { %3081 = vmatprep.subr.mxu1 %v3984_v0 }
 0x2f6   :  { %3082 = vmatpush3.msra.mxu1 %v641_v43  ;;  %v914_v43 = vld [vmem:[#allocation5 + $0x90] sm:$0xff] }
 0x2f7   :  { %3083 = vmatprep.subr.mxu1 %v3984_v0 }
 0x2f8   :  { %3084 = vmatpush3.msra.mxu1 %v640_v44  ;;  %v913_v44 = vld [vmem:[#allocation5 + $0x88] sm:$0xff] }
 0x2f9   :  { %3085 = vmatprep.subr.mxu1 %v3984_v0 }
 0x2fa   :  { %3086 = vmatpush3.msra.mxu1 %v639_v46  ;;  %v1023_v46 = vld [vmem:[#allocation7 + $0xf8] sm:$0xff] }
 0x2fb   :  { %3087 = vmatprep.subr.mxu1 %v3984_v0 }
 0x2fc   :  { %3088 = vmatpush3.msra.mxu1 %v638_v48  ;;  %v1021_v48 = vld [vmem:[#allocation7 + $0xe8] sm:$0xff] }
 0x2fd   :  { %3089 = vmatprep.subr.mxu1 %v3984_v0 }
 0x2fe   :  { %3090 = vmatpush3.msra.mxu1 %v637_v50  ;;  %v1019_v50 = vld [vmem:[#allocation7 + $0xd8] sm:$0xff] }
 0x2ff   :  { %3129 = vmatprep.subr.mxu1 %v3984_v0 }
 0x39f   :  { %v546_v52 = vpop.f32.mrf.mxu1 }
 0x3a0   :  { %v547_v53 = vadd.f32 %v2449_v51, %v546_v52  ;;  %v1018_v51 = vld [vmem:[#allocation7 + $0xd0] sm:$0xff]  ;;  %v1017_v52 = vld [vmem:[#allocation7 + $0xc8] sm:$0xff] }
 0x3a1   :  { %v3023_v54 = vpop.f32.mrf.mxu1 }
 0x3a2   :  { %v550_v55 = vmax.f32 %v547_v53, 0.0  ;;  %v1016_v53 = vld [vmem:[#allocation7 + $0xc0] sm:$0xff]  ;;  %v1015_v54 = vld [vmem:[#allocation7 + $0xb8] sm:$0xff] }
 0x3a4   :  { %3057 = vmatmul.mubr.f32.vlgmr.msra.gmra.mxu0 %v550_v55  ;;  %3092 = vmatmul.mubr.f32.vlgmr.msra.gmra.mxu1 %v550_v55  ;;  %v1014_v55 = vld [vmem:[#allocation7 + $0xb0] sm:$0xff] }
 0x3a5   :  { %3095 = vmatpush3.msra.mxu0 %v738_v56  ;;  %3130 = vmatpush3.msra.mxu1 %v831_v57  ;;  %v1013_v56 = vld [vmem:[#allocation7 + $0xa8] sm:$0xff]  ;;  %v1012_v57 = vld [vmem:[#allocation7 + $0xa0] sm:$0xff] }
 0x3a6   :  { %3096 = vmatprep.subr.mxu0 %v3984_v0  ;;  %3131 = vmatprep.subr.mxu1 %v3984_v0 }
 0x3a7   :  { %3097 = vmatpush3.msra.mxu0 %v737_v58  ;;  %3132 = vmatpush3.msra.mxu1 %v830_v59  ;;  %v1011_v58 = vld [vmem:[#allocation7 + $0x98] sm:$0xff] }
 0x3a8   :  { %3098 = vmatprep.subr.mxu0 %v3984_v0  ;;  %3133 = vmatprep.subr.mxu1 %v3984_v0  ;;  %v2450_v59 = vld [vmem:[%s4646_s12] ss:$0 sm:$0xff] }
 0x3a9   :  { %3099 = vmatpush3.msra.mxu0 %v736_v60  ;;  %3134 = vmatpush3.msra.mxu1 %v829_v61 }
 0x3aa   :  { %3100 = vmatprep.subr.mxu0 %v3984_v0  ;;  %3135 = vmatprep.subr.mxu1 %v3984_v0 }
 0x3ab   :  { %3101 = vmatpush3.msra.mxu0 %v735_v62  ;;  %3136 = vmatpush3.msra.mxu1 %v828_v63 }
 0x3ac   :  { %3102 = vmatprep.subr.mxu0 %v3984_v0  ;;  %3137 = vmatprep.subr.mxu1 %v3984_v0 }
 0x3ad   :  { %3103 = vmatpush3.msra.mxu0 %v734_v1  ;;  %3138 = vmatpush3.msra.mxu1 %v827_v2 }
 0x3ae   :  { %3104 = vmatprep.subr.mxu0 %v3984_v0  ;;  %3139 = vmatprep.subr.mxu1 %v3984_v0 }
 0x3af   :  { %3105 = vmatpush3.msra.mxu0 %v733_v3  ;;  %3140 = vmatpush3.msra.mxu1 %v826_v4  ;;  %v1010_v3 = vld [vmem:[#allocation7 + $0x90] sm:$0xff]  ;;  %v1009_v4 = vld [vmem:[#allocation7 + $0x88] sm:$0xff] }
 0x3b0   :  { %3106 = vmatprep.subr.mxu0 %v3984_v0  ;;  %3141 = vmatprep.subr.mxu1 %v3984_v0 }
 0x3b1   :  { %3107 = vmatpush3.msra.mxu0 %v732_v5  ;;  %3142 = vmatpush3.msra.mxu1 %v825_v6  ;;  %v1008_v5 = vld [vmem:[#allocation7 + $0x80] sm:$0xff]  ;;  %v1119_v6 = vld [vmem:[#allocation8 + $0xf8] sm:$0xff] }
 0x3b2   :  { %3108 = vmatprep.subr.mxu0 %v3984_v0  ;;  %3143 = vmatprep.subr.mxu1 %v3984_v0 }
 0x3b3   :  { %3109 = vmatpush3.msra.mxu0 %v731_v7  ;;  %3144 = vmatpush3.msra.mxu1 %v824_v8  ;;  %v1118_v7 = vld [vmem:[#allocation8 + $0xf0] sm:$0xff]  ;;  %v1116_v8 = vld [vmem:[#allocation8 + $0xe0] sm:$0xff] }
 0x3b4   :  { %3110 = vmatprep.subr.mxu0 %v3984_v0  ;;  %3145 = vmatprep.subr.mxu1 %v3984_v0 }
 0x3b5   :  { %3111 = vmatpush3.msra.mxu0 %v730_v9  ;;  %3146 = vmatpush3.msra.mxu1 %v823_v10  ;;  %v1115_v9 = vld [vmem:[#allocation8 + $0xd8] sm:$0xff]  ;;  %v1114_v10 = vld [vmem:[#allocation8 + $0xd0] sm:$0xff] }
 0x3b6   :  { %3112 = vmatprep.subr.mxu0 %v3984_v0  ;;  %3147 = vmatprep.subr.mxu1 %v3984_v0 }
 0x3b7   :  { %3113 = vmatpush3.msra.mxu0 %v729_v11  ;;  %3148 = vmatpush3.msra.mxu1 %v822_v12  ;;  %v1113_v11 = vld [vmem:[#allocation8 + $0xc8] sm:$0xff]  ;;  %v1112_v12 = vld [vmem:[#allocation8 + $0xc0] sm:$0xff] }
 0x3b8   :  { %3114 = vmatprep.subr.mxu0 %v3984_v0  ;;  %3149 = vmatprep.subr.mxu1 %v3984_v0 }
 0x3b9   :  { %3115 = vmatpush3.msra.mxu0 %v728_v13  ;;  %3150 = vmatpush3.msra.mxu1 %v821_v14  ;;  %v1111_v13 = vld [vmem:[#allocation8 + $0xb8] sm:$0xff]  ;;  %v1110_v14 = vld [vmem:[#allocation8 + $0xb0] sm:$0xff] }
 0x3ba   :  { %3116 = vmatprep.subr.mxu0 %v3984_v0  ;;  %3151 = vmatprep.subr.mxu1 %v3984_v0 }
 0x3bb   :  { %3117 = vmatpush3.msra.mxu0 %v727_v15  ;;  %3152 = vmatpush3.msra.mxu1 %v820_v16  ;;  %v1109_v15 = vld [vmem:[#allocation8 + $0xa8] sm:$0xff]  ;;  %v1108_v16 = vld [vmem:[#allocation8 + $0xa0] sm:$0xff] }
 0x3bc   :  { %3118 = vmatprep.subr.mxu0 %v3984_v0  ;;  %3153 = vmatprep.subr.mxu1 %v3984_v0 }
 0x3bd   :  { %3119 = vmatpush3.msra.mxu0 %v726_v17  ;;  %3154 = vmatpush3.msra.mxu1 %v819_v18  ;;  %v1107_v17 = vld [vmem:[#allocation8 + $0x98] sm:$0xff] }
 0x3be   :  { %3120 = vmatprep.subr.mxu0 %v3984_v0  ;;  %3155 = vmatprep.subr.mxu1 %v3984_v0  ;;  %v2453_v18 = vld [vmem:[%s4636_s2 + $0x1] ss:$0 sm:$0xff] }
 0x3bf   :  { %3121 = vmatpush3.msra.mxu0 %v725_v19  ;;  %3156 = vmatpush3.msra.mxu1 %v818_v20 }
 0x3c0   :  { %3122 = vmatprep.subr.mxu0 %v3984_v0  ;;  %3157 = vmatprep.subr.mxu1 %v3984_v0 }
 0x3c1   :  { %3123 = vmatpush3.msra.mxu0 %v724_v21  ;;  %3158 = vmatpush3.msra.mxu1 %v817_v22 }
 0x3c2   :  { %3124 = vmatprep.subr.mxu0 %v3984_v0  ;;  %3159 = vmatprep.subr.mxu1 %v3984_v0 }
 0x3c3   :  { %3126 = vmatprep.mubr.msk.f32.mxu0 %vm3985_vm0, %v3984_v0  ;;  %3161 = vmatprep.mubr.msk.f32.mxu1 %vm3985_vm0, %v3984_v0 }
 0x3c4   :  { %3125 = vmatpush3.msra.mxu0 %v723_v23  ;;  %3160 = vmatpush3.msra.mxu1 %v816_v24  ;;  %v1106_v23 = vld [vmem:[#allocation8 + $0x90] sm:$0xff]  ;;  %v1105_v24 = vld [vmem:[#allocation8 + $0x88] sm:$0xff] }
 0x3c5   :  { %3164 = vmatprep.subr.mxu0 %v3984_v0  ;;  %3199 = vmatprep.subr.mxu1 %v3984_v0 }
 0x464   :  { %v633_v26 = vpop.f32.mrf.mxu0  ;;  %v719_v27 = vpop.f32.mrf.mxu1 }
 0x465   :  { %3127 = vmatmul.mubr.f32.vlgmr.msra.gmra.mxu0 %v633_v26  ;;  %3162 = vmatmul.mubr.f32.vlgmr.msra.gmra.mxu1 %v719_v27  ;;  %v1215_v26 = vld [vmem:[#allocation10 + $0xf8] sm:$0xff]  ;;  %v1214_v27 = vld [vmem:[#allocation10 + $0xf0] sm:$0xff] }
 0x466   :  { %v3058_v29 = vpop.f32.mrf.mxu0  ;;  %v3093_v31 = vpop.f32.mrf.mxu1  ;;  %3165 = vmatpush3.msra.mxu0 %v927_v25  ;;  %3196 = vmatprep.mubr.msk.f32.mxu0 %vm3985_vm0, %v3984_v0  ;;  %v1104_v25 = vld [vmem:[#allocation8 + $0x80] sm:$0xff] }
 0x467   :  { %3166 = vmatprep.subr.mxu0 %v3984_v0  ;;  %3231 = vmatprep.mubr.msk.f32.mxu1 %vm3985_vm0, %v3984_v0  ;;  %v1212_v29 = vld [vmem:[#allocation10 + $0xe0] sm:$0xff]  ;;  %v1211_v31 = vld [vmem:[#allocation10 + $0xd8] sm:$0xff] }
 0x468   :  { %3167 = vmatpush3.msra.mxu0 %v926_v28  ;;  %3200 = vmatpush3.msra.mxu1 %v1023_v46  ;;  %v1213_v28 = vld [vmem:[#allocation10 + $0xe8] sm:$0xff] }
 0x469   :  { %3168 = vmatprep.subr.mxu0 %v3984_v0  ;;  %3201 = vmatprep.subr.mxu1 %v3984_v0  ;;  %v1201_v46 = vld [vmem:[#allocation10 + $0x88] sm:$0xff] }
 0x46a   :  { %3169 = vmatpush3.msra.mxu0 %v925_v32  ;;  %3202 = vmatpush3.msra.mxu1 %v1022_v47  ;;  %v1210_v32 = vld [vmem:[#allocation10 + $0xd0] sm:$0xff]  ;;  %v1200_v47 = vld [vmem:[#allocation10 + $0x80] sm:$0xff] }
 0x46b   :  { %3170 = vmatprep.subr.mxu0 %v3984_v0  ;;  %3203 = vmatprep.subr.mxu1 %v3984_v0 }
 0x46c   :  { %3171 = vmatpush3.msra.mxu0 %v924_v33  ;;  %3204 = vmatpush3.msra.mxu1 %v1021_v48  ;;  %v1209_v33 = vld [vmem:[#allocation10 + $0xc8] sm:$0xff]  ;;  %v1311_v48 = vld [vmem:[#allocation11 + $0xf8] sm:$0xff] }
 0x46d   :  { %3172 = vmatprep.subr.mxu0 %v3984_v0  ;;  %3205 = vmatprep.subr.mxu1 %v3984_v0 }
 0x46e   :  { %3173 = vmatpush3.msra.mxu0 %v923_v34  ;;  %3206 = vmatpush3.msra.mxu1 %v1020_v49  ;;  %v1208_v34 = vld [vmem:[#allocation10 + $0xc0] sm:$0xff]  ;;  %v1310_v49 = vld [vmem:[#allocation11 + $0xf0] sm:$0xff] }
 0x46f   :  { %3174 = vmatprep.subr.mxu0 %v3984_v0  ;;  %3207 = vmatprep.subr.mxu1 %v3984_v0 }
 0x470   :  { %3175 = vmatpush3.msra.mxu0 %v922_v35  ;;  %3208 = vmatpush3.msra.mxu1 %v1019_v50  ;;  %v1207_v35 = vld [vmem:[#allocation10 + $0xb8] sm:$0xff]  ;;  %v1309_v50 = vld [vmem:[#allocation11 + $0xe8] sm:$0xff] }
 0x471   :  { %3176 = vmatprep.subr.mxu0 %v3984_v0  ;;  %3209 = vmatprep.subr.mxu1 %v3984_v0 }
 0x472   :  { %3177 = vmatpush3.msra.mxu0 %v921_v36  ;;  %3210 = vmatpush3.msra.mxu1 %v1018_v51  ;;  %v1206_v36 = vld [vmem:[#allocation10 + $0xb0] sm:$0xff]  ;;  %v1308_v51 = vld [vmem:[#allocation11 + $0xe0] sm:$0xff] }
 0x473   :  { %3178 = vmatprep.subr.mxu0 %v3984_v0  ;;  %3211 = vmatprep.subr.mxu1 %v3984_v0 }
 0x474   :  { %3179 = vmatpush3.msra.mxu0 %v920_v37  ;;  %3212 = vmatpush3.msra.mxu1 %v1017_v52  ;;  %v1205_v37 = vld [vmem:[#allocation10 + $0xa8] sm:$0xff]  ;;  %v1307_v52 = vld [vmem:[#allocation11 + $0xd8] sm:$0xff] }
 0x475   :  { %3180 = vmatprep.subr.mxu0 %v3984_v0  ;;  %3213 = vmatprep.subr.mxu1 %v3984_v0 }
 0x476   :  { %3181 = vmatpush3.msra.mxu0 %v919_v38  ;;  %3214 = vmatpush3.msra.mxu1 %v1016_v53  ;;  %v1204_v38 = vld [vmem:[#allocation10 + $0xa0] sm:$0xff]  ;;  %v1306_v53 = vld [vmem:[#allocation11 + $0xd0] sm:$0xff] }
 0x477   :  { %3182 = vmatprep.subr.mxu0 %v3984_v0  ;;  %3215 = vmatprep.subr.mxu1 %v3984_v0 }
 0x478   :  { %3183 = vmatpush3.msra.mxu0 %v918_v39  ;;  %3216 = vmatpush3.msra.mxu1 %v1015_v54  ;;  %v1203_v39 = vld [vmem:[#allocation10 + $0x98] sm:$0xff]  ;;  %v1305_v54 = vld [vmem:[#allocation11 + $0xc8] sm:$0xff] }
 0x479   :  { %3184 = vmatprep.subr.mxu0 %v3984_v0  ;;  %3217 = vmatprep.subr.mxu1 %v3984_v0 }
 0x47a   :  { %3185 = vmatpush3.msra.mxu0 %v917_v40  ;;  %3218 = vmatpush3.msra.mxu1 %v1014_v55  ;;  %v2455_v40 = vld [vmem:[%s4638_s4 + $0x1] ss:$0 sm:$0xff]  ;;  %v1304_v55 = vld [vmem:[#allocation11 + $0xc0] sm:$0xff] }
 0x47b   :  { %3186 = vmatprep.subr.mxu0 %v3984_v0  ;;  %3219 = vmatprep.subr.mxu1 %v3984_v0 }
 0x47c   :  { %3187 = vmatpush3.msra.mxu0 %v916_v41  ;;  %3220 = vmatpush3.msra.mxu1 %v1013_v56  ;;  %v1303_v56 = vld [vmem:[#allocation11 + $0xb8] sm:$0xff] }
 0x47d   :  { %3188 = vmatprep.subr.mxu0 %v3984_v0  ;;  %3221 = vmatprep.subr.mxu1 %v3984_v0 }
 0x47e   :  { %3189 = vmatpush3.msra.mxu0 %v915_v42  ;;  %3222 = vmatpush3.msra.mxu1 %v1012_v57  ;;  %v1302_v57 = vld [vmem:[#allocation11 + $0xb0] sm:$0xff] }
 0x47f   :  { %3190 = vmatprep.subr.mxu0 %v3984_v0  ;;  %3223 = vmatprep.subr.mxu1 %v3984_v0 }
 0x480   :  { %3191 = vmatpush3.msra.mxu0 %v914_v43  ;;  %3224 = vmatpush3.msra.mxu1 %v1011_v58  ;;  %v1301_v58 = vld [vmem:[#allocation11 + $0xa8] sm:$0xff] }
 0x481   :  { %3192 = vmatprep.subr.mxu0 %v3984_v0  ;;  %3225 = vmatprep.subr.mxu1 %v3984_v0 }
 0x482   :  { %3193 = vmatpush3.msra.mxu0 %v913_v44  ;;  %3226 = vmatpush3.msra.mxu1 %v1010_v3 }
 0x483   :  { %3194 = vmatprep.subr.mxu0 %v3984_v0  ;;  %3227 = vmatprep.subr.mxu1 %v3984_v0 }
 0x484   :  { %3195 = vmatpush3.msra.mxu0 %v912_v45  ;;  %3228 = vmatpush3.msra.mxu1 %v1009_v4  ;;  %v1202_v45 = vld [vmem:[#allocation10 + $0x90] sm:$0xff] }
 0x485   :  { %3234 = vmatprep.subr.mxu0 %v3984_v0  ;;  %3229 = vmatprep.subr.mxu1 %v3984_v0 }
 0x486   :  { %3230 = vmatpush3.msra.mxu1 %v1008_v5  ;;  %v1398_v5 = vld [vmem:[#allocation13 + $0xf8] sm:$0xff] }
 0x487   :  { %3269 = vmatprep.subr.mxu1 %v3984_v0 }
 0x525   :  { %v812_v60 = vpop.f32.mrf.mxu0  ;;  %v4321_v61 = vpop.f32.mrf.mxu1 }
 0x526   :  { %v813_v62 = vadd.f32 %v2450_v59, %v812_v60  ;;  %v1300_v59 = vld [vmem:[#allocation11 + $0xa0] sm:$0xff]  ;;  %v1299_v60 = vld [vmem:[#allocation11 + $0x98] sm:$0xff] }
 0x527   :  { %v3128_v63 = vpop.f32.mrf.mxu0  ;;  %v3163_v1 = vpop.f32.mrf.mxu1 }
 0x528   :  { %v4324_v2 = vsub.f32 %v4155_v30, %v813_v62  ;;  %v1117_v30 = vld [vmem:[#allocation8 + $0xe8] sm:$0xff]  ;;  %v2457_v62 = vld [vmem:[%s4640_s6 + $0x1] ss:$0 sm:$0xff] }
 0x52a   :  { %3197 = vmatmul.mubr.f32.vlgmr.msra.gmra.mxu0 %v4324_v2 }
 0x52b   :  { %3266 = vmatprep.mubr.msk.f32.mxu0 %vm3985_vm0, %v3984_v0  ;;  %3235 = vmatpush3.msra.mxu0 %v1119_v6  ;;  %v1397_v6 = vld [vmem:[#allocation13 + $0xf0] sm:$0xff] }
 0x52c   :  { %3236 = vmatprep.subr.mxu0 %v3984_v0 }
 0x52d   :  { %3237 = vmatpush3.msra.mxu0 %v1118_v7  ;;  %v1396_v7 = vld [vmem:[#allocation13 + $0xe8] sm:$0xff] }
 0x52e   :  { %3238 = vmatprep.subr.mxu0 %v3984_v0 }
 0x52f   :  { %3239 = vmatpush3.msra.mxu0 %v1117_v30  ;;  %v1395_v30 = vld [vmem:[#allocation13 + $0xe0] sm:$0xff] }
 0x530   :  { %3240 = vmatprep.subr.mxu0 %v3984_v0 }
 0x531   :  { %3241 = vmatpush3.msra.mxu0 %v1116_v8  ;;  %v1394_v8 = vld [vmem:[#allocation13 + $0xd8] sm:$0xff] }
 0x532   :  { %3242 = vmatprep.subr.mxu0 %v3984_v0 }
 0x533   :  { %3243 = vmatpush3.msra.mxu0 %v1115_v9  ;;  %v1393_v9 = vld [vmem:[#allocation13 + $0xd0] sm:$0xff] }
 0x534   :  { %3244 = vmatprep.subr.mxu0 %v3984_v0 }
 0x535   :  { %3245 = vmatpush3.msra.mxu0 %v1114_v10  ;;  %v1392_v10 = vld [vmem:[#allocation13 + $0xc8] sm:$0xff] }
 0x536   :  { %3246 = vmatprep.subr.mxu0 %v3984_v0 }
 0x537   :  { %3247 = vmatpush3.msra.mxu0 %v1113_v11  ;;  %v1391_v11 = vld [vmem:[#allocation13 + $0xc0] sm:$0xff] }
 0x538   :  { %3248 = vmatprep.subr.mxu0 %v3984_v0 }
 0x539   :  { %3249 = vmatpush3.msra.mxu0 %v1112_v12  ;;  %v1390_v12 = vld [vmem:[#allocation13 + $0xb8] sm:$0xff] }
 0x53a   :  { %3250 = vmatprep.subr.mxu0 %v3984_v0 }
 0x53b   :  { %3251 = vmatpush3.msra.mxu0 %v1111_v13  ;;  %v1389_v13 = vld [vmem:[#allocation13 + $0xb0] sm:$0xff] }
 0x53c   :  { %3252 = vmatprep.subr.mxu0 %v3984_v0 }
 0x53d   :  { %3253 = vmatpush3.msra.mxu0 %v1110_v14  ;;  %v1388_v14 = vld [vmem:[#allocation13 + $0xa8] sm:$0xff] }
 0x53e   :  { %3254 = vmatprep.subr.mxu0 %v3984_v0 }
 0x53f   :  { %3255 = vmatpush3.msra.mxu0 %v1109_v15  ;;  %v1387_v15 = vld [vmem:[#allocation13 + $0xa0] sm:$0xff] }
 0x540   :  { %3256 = vmatprep.subr.mxu0 %v3984_v0 }
 0x541   :  { %3257 = vmatpush3.msra.mxu0 %v1108_v16  ;;  %v1386_v16 = vld [vmem:[#allocation13 + $0x98] sm:$0xff] }
 0x542   :  { %3258 = vmatprep.subr.mxu0 %v3984_v0 }
 0x543   :  { %3259 = vmatpush3.msra.mxu0 %v1107_v17  ;;  %v1298_v17 = vld [vmem:[#allocation11 + $0x90] sm:$0xff] }
 0x544   :  { %3260 = vmatprep.subr.mxu0 %v3984_v0 }
 0x545   :  { %3261 = vmatpush3.msra.mxu0 %v1106_v23  ;;  %v2459_v23 = vld [vmem:[%s4642_s8 + $0x1] ss:$0 sm:$0xff] }
 0x546   :  { %3262 = vmatprep.subr.mxu0 %v3984_v0 }
 0x547   :  { %3263 = vmatpush3.msra.mxu0 %v1105_v24 }
 0x548   :  { %3264 = vmatprep.subr.mxu0 %v3984_v0 }
 0x549   :  { %3265 = vmatpush3.msra.mxu0 %v1104_v25 }
 0x54a   :  { %3304 = vmatprep.subr.mxu0 %v3984_v0 }
 0x5ea   :  { %v1002_v19 = vpop.f32.mrf.mxu0 }
 0x5eb   :  { %v1003_v20 = vadd.f32 %v2453_v18, %v1002_v19  ;;  %v1385_v18 = vld [vmem:[#allocation13 + $0x90] sm:$0xff]  ;;  %v1297_v19 = vld [vmem:[#allocation11 + $0x88] sm:$0xff] }
 0x5ec   :  { %v3198_v21 = vpop.f32.mrf.mxu0 }
 0x5ed   :  { %v1006_v22 = vmax.f32 %v1003_v20, 0.0  ;;  %v1384_v20 = vld [vmem:[#allocation13 + $0x88] sm:$0xff]  ;;  %v1296_v21 = vld [vmem:[#allocation11 + $0x80] sm:$0xff] }
 0x5ef   :  { %3232 = vmatmul.mubr.f32.vlgmr.msra.gmra.mxu1 %v1006_v22  ;;  %v1383_v22 = vld [vmem:[#allocation13 + $0x80] sm:$0xff] }
 0x5f0   :  { %3301 = vmatprep.mubr.msk.f32.mxu1 %vm3985_vm0, %v3984_v0  ;;  %3270 = vmatpush3.msra.mxu1 %v1215_v26 }
 0x5f1   :  { %3271 = vmatprep.subr.mxu1 %v3984_v0 }
 0x5f2   :  { %3272 = vmatpush3.msra.mxu1 %v1214_v27 }
 0x5f3   :  { %3273 = vmatprep.subr.mxu1 %v3984_v0 }
 0x5f4   :  { %3274 = vmatpush3.msra.mxu1 %v1213_v28  ;;  %v1485_v28 = vld [vmem:[#allocation14 + $0xf8] sm:$0xff] }
 0x5f5   :  { %3275 = vmatprep.subr.mxu1 %v3984_v0 }
 0x5f6   :  { %3276 = vmatpush3.msra.mxu1 %v1212_v29  ;;  %v1580_v29 = vld [vmem:[#allocation16 + $0xf8] sm:$0xff] }
 0x5f7   :  { %3277 = vmatprep.subr.mxu1 %v3984_v0 }
 0x5f8   :  { %3278 = vmatpush3.msra.mxu1 %v1211_v31  ;;  %v1484_v31 = vld [vmem:[#allocation14 + $0xf0] sm:$0xff] }
 0x5f9   :  { %3279 = vmatprep.subr.mxu1 %v3984_v0 }
 0x5fa   :  { %3280 = vmatpush3.msra.mxu1 %v1210_v32  ;;  %v1579_v32 = vld [vmem:[#allocation16 + $0xf0] sm:$0xff] }
 0x5fb   :  { %3281 = vmatprep.subr.mxu1 %v3984_v0 }
 0x5fc   :  { %3282 = vmatpush3.msra.mxu1 %v1209_v33  ;;  %v1483_v33 = vld [vmem:[#allocation14 + $0xe8] sm:$0xff] }
 0x5fd   :  { %3283 = vmatprep.subr.mxu1 %v3984_v0 }
 0x5fe   :  { %3284 = vmatpush3.msra.mxu1 %v1208_v34  ;;  %v1578_v34 = vld [vmem:[#allocation16 + $0xe8] sm:$0xff] }
 0x5ff   :  { %3285 = vmatprep.subr.mxu1 %v3984_v0 }
 0x600   :  { %3286 = vmatpush3.msra.mxu1 %v1207_v35  ;;  %v1482_v35 = vld [vmem:[#allocation14 + $0xe0] sm:$0xff] }
 0x601   :  { %3287 = vmatprep.subr.mxu1 %v3984_v0 }
 0x602   :  { %3288 = vmatpush3.msra.mxu1 %v1206_v36  ;;  %v1577_v36 = vld [vmem:[#allocation16 + $0xe0] sm:$0xff] }
 0x603   :  { %3289 = vmatprep.subr.mxu1 %v3984_v0 }
 0x604   :  { %3290 = vmatpush3.msra.mxu1 %v1205_v37  ;;  %v1481_v37 = vld [vmem:[#allocation14 + $0xd8] sm:$0xff] }
 0x605   :  { %3291 = vmatprep.subr.mxu1 %v3984_v0 }
 0x606   :  { %3292 = vmatpush3.msra.mxu1 %v1204_v38  ;;  %v1576_v38 = vld [vmem:[#allocation16 + $0xd8] sm:$0xff] }
 0x607   :  { %3293 = vmatprep.subr.mxu1 %v3984_v0 }
 0x608   :  { %3294 = vmatpush3.msra.mxu1 %v1203_v39  ;;  %v1480_v39 = vld [vmem:[#allocation14 + $0xd0] sm:$0xff] }
 0x609   :  { %3295 = vmatprep.subr.mxu1 %v3984_v0 }
 0x60a   :  { %3296 = vmatpush3.msra.mxu1 %v1202_v45  ;;  %v1477_v45 = vld [vmem:[#allocation14 + $0xb8] sm:$0xff] }
 0x60b   :  { %3297 = vmatprep.subr.mxu1 %v3984_v0 }
 0x60c   :  { %3298 = vmatpush3.msra.mxu1 %v1201_v46  ;;  %v1572_v46 = vld [vmem:[#allocation16 + $0xb8] sm:$0xff] }
 0x60d   :  { %3299 = vmatprep.subr.mxu1 %v3984_v0 }
 0x60e   :  { %3300 = vmatpush3.msra.mxu1 %v1200_v47  ;;  %v1476_v47 = vld [vmem:[#allocation14 + $0xb0] sm:$0xff] }
 0x60f   :  { %3339 = vmatprep.subr.mxu1 %v3984_v0 }
 0x6af   :  { %v1098_v41 = vpop.f32.mrf.mxu1 }
 0x6b0   :  { %v1099_v42 = vadd.f32 %v2455_v40, %v1098_v41  ;;  %v1575_v40 = vld [vmem:[#allocation16 + $0xd0] sm:$0xff]  ;;  %v1479_v41 = vld [vmem:[#allocation14 + $0xc8] sm:$0xff] }
 0x6b1   :  { %v3233_v43 = vpop.f32.mrf.mxu1 }
 0x6b2   :  { %v1102_v44 = vmax.f32 %v1099_v42, 0.0  ;;  %v1574_v42 = vld [vmem:[#allocation16 + $0xc8] sm:$0xff]  ;;  %v1478_v43 = vld [vmem:[#allocation14 + $0xc0] sm:$0xff] }
 0x6b4   :  { %3267 = vmatmul.mubr.f32.vlgmr.msra.gmra.mxu0 %v1102_v44  ;;  %v1573_v44 = vld [vmem:[#allocation16 + $0xc0] sm:$0xff] }
 0x6b5   :  { %3336 = vmatprep.mubr.msk.f32.mxu0 %vm3985_vm0, %v3984_v0  ;;  %3305 = vmatpush3.msra.mxu0 %v1311_v48  ;;  %v1571_v48 = vld [vmem:[#allocation16 + $0xb0] sm:$0xff] }
 0x6b6   :  { %3306 = vmatprep.subr.mxu0 %v3984_v0 }
 0x6b7   :  { %3307 = vmatpush3.msra.mxu0 %v1310_v49  ;;  %v1475_v49 = vld [vmem:[#allocation14 + $0xa8] sm:$0xff] }
 0x6b8   :  { %3308 = vmatprep.subr.mxu0 %v3984_v0 }
 0x6b9   :  { %3309 = vmatpush3.msra.mxu0 %v1309_v50  ;;  %v1570_v50 = vld [vmem:[#allocation16 + $0xa8] sm:$0xff] }
 0x6ba   :  { %3310 = vmatprep.subr.mxu0 %v3984_v0 }
 0x6bb   :  { %3311 = vmatpush3.msra.mxu0 %v1308_v51  ;;  %v1474_v51 = vld [vmem:[#allocation14 + $0xa0] sm:$0xff] }
 0x6bc   :  { %3312 = vmatprep.subr.mxu0 %v3984_v0 }
 0x6bd   :  { %3313 = vmatpush3.msra.mxu0 %v1307_v52  ;;  %v1569_v52 = vld [vmem:[#allocation16 + $0xa0] sm:$0xff] }
 0x6be   :  { %3314 = vmatprep.subr.mxu0 %v3984_v0 }
 0x6bf   :  { %3315 = vmatpush3.msra.mxu0 %v1306_v53  ;;  %v1473_v53 = vld [vmem:[#allocation14 + $0x98] sm:$0xff] }
 0x6c0   :  { %3316 = vmatprep.subr.mxu0 %v3984_v0 }
 0x6c1   :  { %3317 = vmatpush3.msra.mxu0 %v1305_v54  ;;  %v1568_v54 = vld [vmem:[#allocation16 + $0x98] sm:$0xff] }
 0x6c2   :  { %3318 = vmatprep.subr.mxu0 %v3984_v0 }
 0x6c3   :  { %3319 = vmatpush3.msra.mxu0 %v1304_v55  ;;  %v1472_v55 = vld [vmem:[#allocation14 + $0x90] sm:$0xff] }
 0x6c4   :  { %3320 = vmatprep.subr.mxu0 %v3984_v0 }
 0x6c5   :  { %3321 = vmatpush3.msra.mxu0 %v1303_v56  ;;  %v1567_v56 = vld [vmem:[#allocation16 + $0x90] sm:$0xff] }
 0x6c6   :  { %3322 = vmatprep.subr.mxu0 %v3984_v0 }
 0x6c7   :  { %3323 = vmatpush3.msra.mxu0 %v1302_v57  ;;  %v1471_v57 = vld [vmem:[#allocation14 + $0x88] sm:$0xff] }
 0x6c8   :  { %3324 = vmatprep.subr.mxu0 %v3984_v0 }
 0x6c9   :  { %3325 = vmatpush3.msra.mxu0 %v1301_v58  ;;  %v1566_v58 = vld [vmem:[#allocation16 + $0x88] sm:$0xff] }
 0x6ca   :  { %3326 = vmatprep.subr.mxu0 %v3984_v0 }
 0x6cb   :  { %3327 = vmatpush3.msra.mxu0 %v1300_v59  ;;  %v1470_v59 = vld [vmem:[#allocation14 + $0x80] sm:$0xff] }
 0x6cc   :  { %3328 = vmatprep.subr.mxu0 %v3984_v0 }
 0x6cd   :  { %3329 = vmatpush3.msra.mxu0 %v1299_v60  ;;  %v1565_v60 = vld [vmem:[#allocation16 + $0x80] sm:$0xff] }
 0x6ce   :  { %3330 = vmatprep.subr.mxu0 %v3984_v0 }
 0x6cf   :  { %3331 = vmatpush3.msra.mxu0 %v1298_v17  ;;  %v1663_v17 = vld [vmem:[#allocation5 + $0x108] sm:$0xff] }
 0x6d0   :  { %3332 = vmatprep.subr.mxu0 %v3984_v0 }
 0x6d1   :  { %3333 = vmatpush3.msra.mxu0 %v1297_v19  ;;  %v1773_v19 = vld [vmem:[#allocation7 + $0x178] sm:$0xff] }
 0x6d2   :  { %3334 = vmatprep.subr.mxu0 %v3984_v0 }
 0x6d3   :  { %3335 = vmatpush3.msra.mxu0 %v1296_v21  ;;  %v1771_v21 = vld [vmem:[#allocation7 + $0x168] sm:$0xff] }
 0x6d4   :  { %3374 = vmatprep.subr.mxu0 %v3984_v0 }
 0x774   :  { %v1194_v63 = vpop.f32.mrf.mxu0 }
 0x775   :  { %v1195_v1 = vadd.f32 %v2457_v62, %v1194_v63  ;;  %v1677_v62 = vld [vmem:[#allocation5 + $0x178] sm:$0xff] }
 0x776   :  { %v3268_v3 = vpop.f32.mrf.mxu0 }
 0x777   :  { %v1198_v4 = vmax.f32 %v1195_v1, 0.0  ;;  %v1676_v3 = vld [vmem:[#allocation5 + $0x170] sm:$0xff] }
 0x779   :  { %3302 = vmatmul.mubr.f32.vlgmr.msra.gmra.mxu1 %v1198_v4 }
 0x77a   :  { %3340 = vmatpush3.msra.mxu1 %v1398_v5  ;;  %3371 = vmatprep.mubr.msk.f32.mxu1 %vm3985_vm0, %v3984_v0 }
 0x77b   :  { %3341 = vmatprep.subr.mxu1 %v3984_v0 }
 0x77c   :  { %3342 = vmatpush3.msra.mxu1 %v1397_v6  ;;  %v1675_v6 = vld [vmem:[#allocation5 + $0x168] sm:$0xff] }
 0x77d   :  { %3343 = vmatprep.subr.mxu1 %v3984_v0 }
 0x77e   :  { %3344 = vmatpush3.msra.mxu1 %v1396_v7  ;;  %v1674_v7 = vld [vmem:[#allocation5 + $0x160] sm:$0xff] }
 0x77f   :  { %3345 = vmatprep.subr.mxu1 %v3984_v0 }
 0x780   :  { %3346 = vmatpush3.msra.mxu1 %v1395_v30  ;;  %v1673_v30 = vld [vmem:[#allocation5 + $0x158] sm:$0xff] }
 0x781   :  { %3347 = vmatprep.subr.mxu1 %v3984_v0 }
 0x782   :  { %3348 = vmatpush3.msra.mxu1 %v1394_v8  ;;  %v1672_v8 = vld [vmem:[#allocation5 + $0x150] sm:$0xff] }
 0x783   :  { %3349 = vmatprep.subr.mxu1 %v3984_v0 }
 0x784   :  { %3350 = vmatpush3.msra.mxu1 %v1393_v9  ;;  %v1671_v9 = vld [vmem:[#allocation5 + $0x148] sm:$0xff] }
 0x785   :  { %3351 = vmatprep.subr.mxu1 %v3984_v0 }
 0x786   :  { %3352 = vmatpush3.msra.mxu1 %v1392_v10  ;;  %v1670_v10 = vld [vmem:[#allocation5 + $0x140] sm:$0xff] }
 0x787   :  { %3353 = vmatprep.subr.mxu1 %v3984_v0 }
 0x788   :  { %3354 = vmatpush3.msra.mxu1 %v1391_v11  ;;  %v1669_v11 = vld [vmem:[#allocation5 + $0x138] sm:$0xff] }
 0x789   :  { %3355 = vmatprep.subr.mxu1 %v3984_v0 }
 0x78a   :  { %3356 = vmatpush3.msra.mxu1 %v1390_v12  ;;  %v1668_v12 = vld [vmem:[#allocation5 + $0x130] sm:$0xff] }
 0x78b   :  { %3357 = vmatprep.subr.mxu1 %v3984_v0 }
 0x78c   :  { %3358 = vmatpush3.msra.mxu1 %v1389_v13  ;;  %v1667_v13 = vld [vmem:[#allocation5 + $0x128] sm:$0xff] }
 0x78d   :  { %3359 = vmatprep.subr.mxu1 %v3984_v0 }
 0x78e   :  { %3360 = vmatpush3.msra.mxu1 %v1388_v14  ;;  %v1666_v14 = vld [vmem:[#allocation5 + $0x120] sm:$0xff] }
 0x78f   :  { %3361 = vmatprep.subr.mxu1 %v3984_v0 }
 0x790   :  { %3362 = vmatpush3.msra.mxu1 %v1387_v15  ;;  %v1665_v15 = vld [vmem:[#allocation5 + $0x118] sm:$0xff] }
 0x791   :  { %3363 = vmatprep.subr.mxu1 %v3984_v0 }
 0x792   :  { %3364 = vmatpush3.msra.mxu1 %v1386_v16  ;;  %v1664_v16 = vld [vmem:[#allocation5 + $0x110] sm:$0xff] }
 0x793   :  { %3365 = vmatprep.subr.mxu1 %v3984_v0 }
 0x794   :  { %3366 = vmatpush3.msra.mxu1 %v1385_v18  ;;  %v1662_v18 = vld [vmem:[#allocation5 + $0x100] sm:$0xff] }
 0x795   :  { %3367 = vmatprep.subr.mxu1 %v3984_v0 }
 0x796   :  { %3368 = vmatpush3.msra.mxu1 %v1384_v20  ;;  %v1772_v20 = vld [vmem:[#allocation7 + $0x170] sm:$0xff] }
 0x797   :  { %3369 = vmatprep.subr.mxu1 %v3984_v0 }
 0x798   :  { %3370 = vmatpush3.msra.mxu1 %v1383_v22  ;;  %v1770_v22 = vld [vmem:[#allocation7 + $0x160] sm:$0xff] }
 0x799   :  { %3409 = vmatprep.subr.mxu1 %v3984_v0 }
 0x839   :  { %v1290_v24 = vpop.f32.mrf.mxu1 }
 0x83a   :  { %v1291_v25 = vadd.f32 %v2459_v23, %v1290_v24  ;;  %v1769_v23 = vld [vmem:[#allocation7 + $0x158] sm:$0xff]  ;;  %v1768_v24 = vld [vmem:[#allocation7 + $0x150] sm:$0xff] }
 0x83b   :  { %v3303_v26 = vpop.f32.mrf.mxu1 }
 0x83c   :  { %v1294_v27 = vmax.f32 %v1291_v25, 0.0  ;;  %v1767_v25 = vld [vmem:[#allocation7 + $0x148] sm:$0xff]  ;;  %v1766_v26 = vld [vmem:[#allocation7 + $0x140] sm:$0xff] }
 0x83e   :  { %3337 = vmatmul.mubr.f32.vlgmr.msra.gmra.mxu0 %v1294_v27  ;;  %3372 = vmatmul.mubr.f32.vlgmr.msra.gmra.mxu1 %v1294_v27  ;;  %v1765_v27 = vld [vmem:[#allocation7 + $0x138] sm:$0xff] }
 0x83f   :  { %3375 = vmatpush3.msra.mxu0 %v1485_v28  ;;  %3410 = vmatpush3.msra.mxu1 %v1580_v29  ;;  %v1764_v28 = vld [vmem:[#allocation7 + $0x130] sm:$0xff]  ;;  %v1763_v29 = vld [vmem:[#allocation7 + $0x128] sm:$0xff] }
 0x840   :  { %3376 = vmatprep.subr.mxu0 %v3984_v0  ;;  %3411 = vmatprep.subr.mxu1 %v3984_v0 }
 0x841   :  { %3377 = vmatpush3.msra.mxu0 %v1484_v31  ;;  %3412 = vmatpush3.msra.mxu1 %v1579_v32  ;;  %v1762_v31 = vld [vmem:[#allocation7 + $0x120] sm:$0xff]  ;;  %v1761_v32 = vld [vmem:[#allocation7 + $0x118] sm:$0xff] }
 0x842   :  { %3378 = vmatprep.subr.mxu0 %v3984_v0  ;;  %3413 = vmatprep.subr.mxu1 %v3984_v0 }
 0x843   :  { %3379 = vmatpush3.msra.mxu0 %v1483_v33  ;;  %3414 = vmatpush3.msra.mxu1 %v1578_v34  ;;  %v2451_v33 = vld [vmem:[%s4648_s14] ss:$0 sm:$0xff]  ;;  %v2461_v34 = vld [vmem:[%s4646_s12 + $0x1] ss:$0 sm:$0xff] }
 0x844   :  { %3380 = vmatprep.subr.mxu0 %v3984_v0  ;;  %3415 = vmatprep.subr.mxu1 %v3984_v0 }
 0x845   :  { %3381 = vmatpush3.msra.mxu0 %v1482_v35  ;;  %3416 = vmatpush3.msra.mxu1 %v1577_v36  ;;  %v2463_v35 = vld [vmem:[%s4648_s14 + $0x1] ss:$0 sm:$0xff] }
 0x846   :  { %3382 = vmatprep.subr.mxu0 %v3984_v0  ;;  %3417 = vmatprep.subr.mxu1 %v3984_v0 }
 0x847   :  { %3383 = vmatpush3.msra.mxu0 %v1481_v37  ;;  %3418 = vmatpush3.msra.mxu1 %v1576_v38  ;;  %v906_v38 = vadd.f32 %v2451_v33, %v4321_v61  ;;  %v1758_v61 = vld [vmem:[#allocation7 + $0x100] sm:$0xff]  ;;  %v2055_v33 = vld [vmem:[#allocation11 + $0x148] sm:$0xff] }
 0x848   :  { %3384 = vmatprep.subr.mxu0 %v3984_v0  ;;  %3419 = vmatprep.subr.mxu1 %v3984_v0 }
 0x849   :  { %3385 = vmatpush3.msra.mxu0 %v1480_v39  ;;  %3420 = vmatpush3.msra.mxu1 %v1575_v40 }
 0x84a   :  { %3386 = vmatprep.subr.mxu0 %v3984_v0  ;;  %3421 = vmatprep.subr.mxu1 %v3984_v0 }
 0x84b   :  { %3387 = vmatpush3.msra.mxu0 %v1479_v41  ;;  %3422 = vmatpush3.msra.mxu1 %v1574_v42 }
 0x84c   :  { %3388 = vmatprep.subr.mxu0 %v3984_v0  ;;  %3423 = vmatprep.subr.mxu1 %v3984_v0 }
 0x84d   :  { %3389 = vmatpush3.msra.mxu0 %v1478_v43  ;;  %3424 = vmatpush3.msra.mxu1 %v1573_v44 }
 0x84e   :  { %3390 = vmatprep.subr.mxu0 %v3984_v0  ;;  %3425 = vmatprep.subr.mxu1 %v3984_v0 }
 0x84f   :  { %3391 = vmatpush3.msra.mxu0 %v1477_v45  ;;  %3426 = vmatpush3.msra.mxu1 %v1572_v46  ;;  %v1760_v45 = vld [vmem:[#allocation7 + $0x110] sm:$0xff]  ;;  %v1759_v46 = vld [vmem:[#allocation7 + $0x108] sm:$0xff] }
 0x850   :  { %3392 = vmatprep.subr.mxu0 %v3984_v0  ;;  %3427 = vmatprep.subr.mxu1 %v3984_v0 }
 0x851   :  { %3393 = vmatpush3.msra.mxu0 %v1476_v47  ;;  %3428 = vmatpush3.msra.mxu1 %v1571_v48  ;;  %v1869_v47 = vld [vmem:[#allocation8 + $0x178] sm:$0xff]  ;;  %v1867_v48 = vld [vmem:[#allocation8 + $0x168] sm:$0xff] }
 0x852   :  { %3394 = vmatprep.subr.mxu0 %v3984_v0  ;;  %3429 = vmatprep.subr.mxu1 %v3984_v0 }
 0x853   :  { %3395 = vmatpush3.msra.mxu0 %v1475_v49  ;;  %3430 = vmatpush3.msra.mxu1 %v1570_v50  ;;  %v1866_v49 = vld [vmem:[#allocation8 + $0x160] sm:$0xff]  ;;  %v1865_v50 = vld [vmem:[#allocation8 + $0x158] sm:$0xff] }
 0x854   :  { %3396 = vmatprep.subr.mxu0 %v3984_v0  ;;  %3431 = vmatprep.subr.mxu1 %v3984_v0 }
 0x855   :  { %3397 = vmatpush3.msra.mxu0 %v1474_v51  ;;  %3432 = vmatpush3.msra.mxu1 %v1569_v52  ;;  %v1864_v51 = vld [vmem:[#allocation8 + $0x150] sm:$0xff]  ;;  %v1863_v52 = vld [vmem:[#allocation8 + $0x148] sm:$0xff] }
 0x856   :  { %3398 = vmatprep.subr.mxu0 %v3984_v0  ;;  %3433 = vmatprep.subr.mxu1 %v3984_v0 }
 0x857   :  { %3399 = vmatpush3.msra.mxu0 %v1473_v53  ;;  %3434 = vmatpush3.msra.mxu1 %v1568_v54  ;;  %v1862_v53 = vld [vmem:[#allocation8 + $0x140] sm:$0xff]  ;;  %v1861_v54 = vld [vmem:[#allocation8 + $0x138] sm:$0xff] }
 0x858   :  { %3400 = vmatprep.subr.mxu0 %v3984_v0  ;;  %3435 = vmatprep.subr.mxu1 %v3984_v0 }
 0x859   :  { %3401 = vmatpush3.msra.mxu0 %v1472_v55  ;;  %3436 = vmatpush3.msra.mxu1 %v1567_v56  ;;  %v1860_v55 = vld [vmem:[#allocation8 + $0x130] sm:$0xff]  ;;  %v1859_v56 = vld [vmem:[#allocation8 + $0x128] sm:$0xff] }
 0x85a   :  { %3402 = vmatprep.subr.mxu0 %v3984_v0  ;;  %3437 = vmatprep.subr.mxu1 %v3984_v0 }
 0x85b   :  { %3403 = vmatpush3.msra.mxu0 %v1471_v57  ;;  %3438 = vmatpush3.msra.mxu1 %v1566_v58  ;;  %v1858_v57 = vld [vmem:[#allocation8 + $0x120] sm:$0xff]  ;;  %v1857_v58 = vld [vmem:[#allocation8 + $0x118] sm:$0xff] }
 0x85c   :  { %3404 = vmatprep.subr.mxu0 %v3984_v0  ;;  %3439 = vmatprep.subr.mxu1 %v3984_v0 }
 0x85d   :  { %3406 = vmatprep.mubr.msk.f32.mxu0 %vm3985_vm0, %v3984_v0  ;;  %3441 = vmatprep.mubr.msk.f32.mxu1 %vm3985_vm0, %v3984_v0 }
 0x85e   :  { %3405 = vmatpush3.msra.mxu0 %v1470_v59  ;;  %3440 = vmatpush3.msra.mxu1 %v1565_v60  ;;  %v2465_v59 = vld [vmem:[%s4636_s2 + $0x2] ss:$0 sm:$0xff] }
 0x85f   :  { %3444 = vmatprep.subr.mxu0 %v3984_v0  ;;  %3479 = vmatprep.subr.mxu1 %v3984_v0 }
 0x8fe   :  { %v1378_v63 = vpop.f32.mrf.mxu0  ;;  %v1465_v1 = vpop.f32.mrf.mxu1 }
 0x8ff   :  { %3407 = vmatmul.mubr.f32.vlgmr.msra.gmra.mxu0 %v1378_v63  ;;  %3442 = vmatmul.mubr.f32.vlgmr.msra.gmra.mxu1 %v1465_v1 }
 0x900   :  { %v3338_v4 = vpop.f32.mrf.mxu0  ;;  %v3373_v5 = vpop.f32.mrf.mxu1  ;;  %3445 = vmatpush3.msra.mxu0 %v1677_v62  ;;  %3476 = vmatprep.mubr.msk.f32.mxu0 %vm3985_vm0, %v3984_v0 }
 0x901   :  { %3446 = vmatprep.subr.mxu0 %v3984_v0  ;;  %3511 = vmatprep.mubr.msk.f32.mxu1 %vm3985_vm0, %v3984_v0  ;;  %v1855_v4 = vld [vmem:[#allocation8 + $0x108] sm:$0xff]  ;;  %v1854_v5 = vld [vmem:[#allocation8 + $0x100] sm:$0xff] }
 0x902   :  { %3447 = vmatpush3.msra.mxu0 %v1676_v3  ;;  %3480 = vmatpush3.msra.mxu1 %v1773_v19  ;;  %v1856_v3 = vld [vmem:[#allocation8 + $0x110] sm:$0xff] }
 0x903   :  { %3448 = vmatprep.subr.mxu0 %v3984_v0  ;;  %3481 = vmatprep.subr.mxu1 %v3984_v0 }
 0x904   :  { %3449 = vmatpush3.msra.mxu0 %v1675_v6  ;;  %3482 = vmatpush3.msra.mxu1 %v1772_v20  ;;  %v1965_v6 = vld [vmem:[#allocation10 + $0x178] sm:$0xff] }
 0x905   :  { %3450 = vmatprep.subr.mxu0 %v3984_v0  ;;  %3483 = vmatprep.subr.mxu1 %v3984_v0 }
 0x906   :  { %3451 = vmatpush3.msra.mxu0 %v1674_v7  ;;  %3484 = vmatpush3.msra.mxu1 %v1771_v21  ;;  %v1964_v7 = vld [vmem:[#allocation10 + $0x170] sm:$0xff] }
 0x907   :  { %3452 = vmatprep.subr.mxu0 %v3984_v0  ;;  %3485 = vmatprep.subr.mxu1 %v3984_v0 }
 0x908   :  { %3453 = vmatpush3.msra.mxu0 %v1673_v30  ;;  %3486 = vmatpush3.msra.mxu1 %v1770_v22  ;;  %v1963_v30 = vld [vmem:[#allocation10 + $0x168] sm:$0xff] }
 0x909   :  { %3454 = vmatprep.subr.mxu0 %v3984_v0  ;;  %3487 = vmatprep.subr.mxu1 %v3984_v0 }
 0x90a   :  { %3455 = vmatpush3.msra.mxu0 %v1672_v8  ;;  %3488 = vmatpush3.msra.mxu1 %v1769_v23  ;;  %v1962_v8 = vld [vmem:[#allocation10 + $0x160] sm:$0xff]  ;;  %v1952_v23 = vld [vmem:[#allocation10 + $0x110] sm:$0xff] }
 0x90b   :  { %3456 = vmatprep.subr.mxu0 %v3984_v0  ;;  %3489 = vmatprep.subr.mxu1 %v3984_v0 }
 0x90c   :  { %3457 = vmatpush3.msra.mxu0 %v1671_v9  ;;  %3490 = vmatpush3.msra.mxu1 %v1768_v24  ;;  %v1961_v9 = vld [vmem:[#allocation10 + $0x158] sm:$0xff]  ;;  %v1951_v24 = vld [vmem:[#allocation10 + $0x108] sm:$0xff] }
 0x90d   :  { %3458 = vmatprep.subr.mxu0 %v3984_v0  ;;  %3491 = vmatprep.subr.mxu1 %v3984_v0 }
 0x90e   :  { %3459 = vmatpush3.msra.mxu0 %v1670_v10  ;;  %3492 = vmatpush3.msra.mxu1 %v1767_v25  ;;  %v1960_v10 = vld [vmem:[#allocation10 + $0x150] sm:$0xff]  ;;  %v1950_v25 = vld [vmem:[#allocation10 + $0x100] sm:$0xff] }
 0x90f   :  { %3460 = vmatprep.subr.mxu0 %v3984_v0  ;;  %3493 = vmatprep.subr.mxu1 %v3984_v0 }
 0x910   :  { %3461 = vmatpush3.msra.mxu0 %v1669_v11  ;;  %3494 = vmatpush3.msra.mxu1 %v1766_v26  ;;  %v1959_v11 = vld [vmem:[#allocation10 + $0x148] sm:$0xff]  ;;  %v2061_v26 = vld [vmem:[#allocation11 + $0x178] sm:$0xff] }
 0x911   :  { %3462 = vmatprep.subr.mxu0 %v3984_v0  ;;  %3495 = vmatprep.subr.mxu1 %v3984_v0 }
 0x912   :  { %3463 = vmatpush3.msra.mxu0 %v1668_v12  ;;  %3496 = vmatpush3.msra.mxu1 %v1765_v27  ;;  %v1958_v12 = vld [vmem:[#allocation10 + $0x140] sm:$0xff]  ;;  %v2060_v27 = vld [vmem:[#allocation11 + $0x170] sm:$0xff] }
 0x913   :  { %3464 = vmatprep.subr.mxu0 %v3984_v0  ;;  %3497 = vmatprep.subr.mxu1 %v3984_v0 }
 0x914   :  { %3465 = vmatpush3.msra.mxu0 %v1667_v13  ;;  %3498 = vmatpush3.msra.mxu1 %v1764_v28  ;;  %v1957_v13 = vld [vmem:[#allocation10 + $0x138] sm:$0xff]  ;;  %v2059_v28 = vld [vmem:[#allocation11 + $0x168] sm:$0xff] }
 0x915   :  { %3466 = vmatprep.subr.mxu0 %v3984_v0  ;;  %3499 = vmatprep.subr.mxu1 %v3984_v0 }
 0x916   :  { %3467 = vmatpush3.msra.mxu0 %v1666_v14  ;;  %3500 = vmatpush3.msra.mxu1 %v1763_v29  ;;  %v1956_v14 = vld [vmem:[#allocation10 + $0x130] sm:$0xff]  ;;  %v2058_v29 = vld [vmem:[#allocation11 + $0x160] sm:$0xff] }
 0x917   :  { %3468 = vmatprep.subr.mxu0 %v3984_v0  ;;  %3501 = vmatprep.subr.mxu1 %v3984_v0 }
 0x918   :  { %3469 = vmatpush3.msra.mxu0 %v1665_v15  ;;  %3502 = vmatpush3.msra.mxu1 %v1762_v31  ;;  %v1955_v15 = vld [vmem:[#allocation10 + $0x128] sm:$0xff]  ;;  %v2057_v31 = vld [vmem:[#allocation11 + $0x158] sm:$0xff] }
 0x919   :  { %3470 = vmatprep.subr.mxu0 %v3984_v0  ;;  %3503 = vmatprep.subr.mxu1 %v3984_v0 }
 0x91a   :  { %3471 = vmatpush3.msra.mxu0 %v1664_v16  ;;  %3504 = vmatpush3.msra.mxu1 %v1761_v32  ;;  %v1954_v16 = vld [vmem:[#allocation10 + $0x120] sm:$0xff]  ;;  %v2056_v32 = vld [vmem:[#allocation11 + $0x150] sm:$0xff] }
 0x91b   :  { %3472 = vmatprep.subr.mxu0 %v3984_v0  ;;  %3505 = vmatprep.subr.mxu1 %v3984_v0 }
 0x91c   :  { %3473 = vmatpush3.msra.mxu0 %v1663_v17  ;;  %3506 = vmatpush3.msra.mxu1 %v1760_v45  ;;  %v1953_v17 = vld [vmem:[#allocation10 + $0x118] sm:$0xff] }
 0x91d   :  { %3474 = vmatprep.subr.mxu0 %v3984_v0  ;;  %3507 = vmatprep.subr.mxu1 %v3984_v0 }
 0x91e   :  { %3475 = vmatpush3.msra.mxu0 %v1662_v18  ;;  %3508 = vmatpush3.msra.mxu1 %v1759_v46  ;;  %v2467_v18 = vld [vmem:[%s4638_s4 + $0x2] ss:$0 sm:$0xff] }
 0x91f   :  { %3514 = vmatprep.subr.mxu0 %v3984_v0  ;;  %3509 = vmatprep.subr.mxu1 %v3984_v0 }
 0x920   :  { %3510 = vmatpush3.msra.mxu1 %v1758_v61  ;;  %v2148_v61 = vld [vmem:[#allocation13 + $0x178] sm:$0xff] }
 0x921   :  { %3549 = vmatprep.subr.mxu1 %v3984_v0 }
 0x9bf   :  { %v1560_v36 = vpop.f32.mrf.mxu0  ;;  %v1655_v37 = vpop.f32.mrf.mxu1 }
 0x9c0   :  { %v1561_v39 = vadd.f32 %v2461_v34, %v1560_v36  ;;  %v1656_v40 = vadd.f32 %v2463_v35, %v1655_v37  ;;  %v2054_v34 = vld [vmem:[#allocation11 + $0x140] sm:$0xff]  ;;  %v2053_v35 = vld [vmem:[#allocation11 + $0x138] sm:$0xff]  ;;  %v2052_v36 = vld [vmem:[#allocation11 + $0x130] sm:$0xff] }
 0x9c1   :  { %v3408_v41 = vpop.f32.mrf.mxu0  ;;  %v3443_v42 = vpop.f32.mrf.mxu1  ;;  %v2051_v37 = vld [vmem:[#allocation11 + $0x128] sm:$0xff] }
 0x9c2   :  { %v4494_v43 = vsub.f32 %v4324_v2, %v1561_v39  ;;  %v4496_v44 = vadd.f32 %v1656_v40, %v906_v38  ;;  %v1868_v2 = vld [vmem:[#allocation8 + $0x170] sm:$0xff]  ;;  %v2050_v38 = vld [vmem:[#allocation11 + $0x120] sm:$0xff]  ;;  %v2049_v39 = vld [vmem:[#allocation11 + $0x118] sm:$0xff] }
 0x9c3   :  { %v2469_v40 = vld [vmem:[%s4640_s6 + $0x2] ss:$0 sm:$0xff] }
 0x9c4   :  { %3477 = vmatmul.mubr.f32.vlgmr.msra.gmra.mxu0 %v4494_v43 }
 0x9c5   :  { %3546 = vmatprep.mubr.msk.f32.mxu0 %vm3985_vm0, %v3984_v0  ;;  %3515 = vmatpush3.msra.mxu0 %v1869_v47  ;;  %v2147_v47 = vld [vmem:[#allocation13 + $0x170] sm:$0xff] }
 0x9c6   :  { %3516 = vmatprep.subr.mxu0 %v3984_v0 }
 0x9c7   :  { %3517 = vmatpush3.msra.mxu0 %v1868_v2  ;;  %v2146_v2 = vld [vmem:[#allocation13 + $0x168] sm:$0xff] }
 0x9c8   :  { %3518 = vmatprep.subr.mxu0 %v3984_v0 }
 0x9c9   :  { %3519 = vmatpush3.msra.mxu0 %v1867_v48  ;;  %v2145_v48 = vld [vmem:[#allocation13 + $0x160] sm:$0xff] }
 0x9ca   :  { %3520 = vmatprep.subr.mxu0 %v3984_v0 }
 0x9cb   :  { %3521 = vmatpush3.msra.mxu0 %v1866_v49  ;;  %v2144_v49 = vld [vmem:[#allocation13 + $0x158] sm:$0xff] }
 0x9cc   :  { %3522 = vmatprep.subr.mxu0 %v3984_v0 }
 0x9cd   :  { %3523 = vmatpush3.msra.mxu0 %v1865_v50  ;;  %v2143_v50 = vld [vmem:[#allocation13 + $0x150] sm:$0xff] }
 0x9ce   :  { %3524 = vmatprep.subr.mxu0 %v3984_v0 }
 0x9cf   :  { %3525 = vmatpush3.msra.mxu0 %v1864_v51  ;;  %v2142_v51 = vld [vmem:[#allocation13 + $0x148] sm:$0xff] }
 0x9d0   :  { %3526 = vmatprep.subr.mxu0 %v3984_v0 }
 0x9d1   :  { %3527 = vmatpush3.msra.mxu0 %v1863_v52  ;;  %v2141_v52 = vld [vmem:[#allocation13 + $0x140] sm:$0xff] }
 0x9d2   :  { %3528 = vmatprep.subr.mxu0 %v3984_v0 }
 0x9d3   :  { %3529 = vmatpush3.msra.mxu0 %v1862_v53  ;;  %v2140_v53 = vld [vmem:[#allocation13 + $0x138] sm:$0xff] }
 0x9d4   :  { %3530 = vmatprep.subr.mxu0 %v3984_v0 }
 0x9d5   :  { %3531 = vmatpush3.msra.mxu0 %v1861_v54  ;;  %v2139_v54 = vld [vmem:[#allocation13 + $0x130] sm:$0xff] }
 0x9d6   :  { %3532 = vmatprep.subr.mxu0 %v3984_v0 }
 0x9d7   :  { %3533 = vmatpush3.msra.mxu0 %v1860_v55  ;;  %v2138_v55 = vld [vmem:[#allocation13 + $0x128] sm:$0xff] }
 0x9d8   :  { %3534 = vmatprep.subr.mxu0 %v3984_v0 }
 0x9d9   :  { %3535 = vmatpush3.msra.mxu0 %v1859_v56  ;;  %v2137_v56 = vld [vmem:[#allocation13 + $0x120] sm:$0xff] }
 0x9da   :  { %3536 = vmatprep.subr.mxu0 %v3984_v0 }
 0x9db   :  { %3537 = vmatpush3.msra.mxu0 %v1858_v57  ;;  %v2136_v57 = vld [vmem:[#allocation13 + $0x118] sm:$0xff] }
 0x9dc   :  { %3538 = vmatprep.subr.mxu0 %v3984_v0 }
 0x9dd   :  { %3539 = vmatpush3.msra.mxu0 %v1857_v58  ;;  %v2048_v58 = vld [vmem:[#allocation11 + $0x110] sm:$0xff] }
 0x9de   :  { %3540 = vmatprep.subr.mxu0 %v3984_v0 }
 0x9df   :  { %3541 = vmatpush3.msra.mxu0 %v1856_v3  ;;  %v2471_v3 = vld [vmem:[%s4642_s8 + $0x2] ss:$0 sm:$0xff] }
 0x9e0   :  { %3542 = vmatprep.subr.mxu0 %v3984_v0 }
 0x9e1   :  { %3543 = vmatpush3.msra.mxu0 %v1855_v4 }
 0x9e2   :  { %3544 = vmatprep.subr.mxu0 %v3984_v0 }
 0x9e3   :  { %3545 = vmatpush3.msra.mxu0 %v1854_v5 }
 0x9e4   :  { %3584 = vmatprep.subr.mxu0 %v3984_v0 }
 0xa84   :  { %v1752_v60 = vpop.f32.mrf.mxu0 }
 0xa85   :  { %v1753_v62 = vadd.f32 %v2465_v59, %v1752_v60  ;;  %v2135_v59 = vld [vmem:[#allocation13 + $0x110] sm:$0xff]  ;;  %v2047_v60 = vld [vmem:[#allocation11 + $0x108] sm:$0xff] }
 0xa86   :  { %v3478_v63 = vpop.f32.mrf.mxu0 }
 0xa87   :  { %v1756_v1 = vmax.f32 %v1753_v62, 0.0  ;;  %v2134_v62 = vld [vmem:[#allocation13 + $0x108] sm:$0xff]  ;;  %v2046_v63 = vld [vmem:[#allocation11 + $0x100] sm:$0xff] }
 0xa89   :  { %3512 = vmatmul.mubr.f32.vlgmr.msra.gmra.mxu1 %v1756_v1  ;;  %v2133_v1 = vld [vmem:[#allocation13 + $0x100] sm:$0xff] }
 0xa8a   :  { %3581 = vmatprep.mubr.msk.f32.mxu1 %vm3985_vm0, %v3984_v0  ;;  %3550 = vmatpush3.msra.mxu1 %v1965_v6 }
 0xa8b   :  { %3551 = vmatprep.subr.mxu1 %v3984_v0 }
 0xa8c   :  { %3552 = vmatpush3.msra.mxu1 %v1964_v7 }
 0xa8d   :  { %3553 = vmatprep.subr.mxu1 %v3984_v0 }
 0xa8e   :  { %3554 = vmatpush3.msra.mxu1 %v1963_v30  ;;  %v2235_v30 = vld [vmem:[#allocation14 + $0x178] sm:$0xff] }
 0xa8f   :  { %3555 = vmatprep.subr.mxu1 %v3984_v0 }
 0xa90   :  { %3556 = vmatpush3.msra.mxu1 %v1962_v8  ;;  %v2330_v8 = vld [vmem:[#allocation16 + $0x178] sm:$0xff] }
 0xa91   :  { %3557 = vmatprep.subr.mxu1 %v3984_v0 }
 0xa92   :  { %3558 = vmatpush3.msra.mxu1 %v1961_v9  ;;  %v2234_v9 = vld [vmem:[#allocation14 + $0x170] sm:$0xff] }
 0xa93   :  { %3559 = vmatprep.subr.mxu1 %v3984_v0 }
 0xa94   :  { %3560 = vmatpush3.msra.mxu1 %v1960_v10  ;;  %v2329_v10 = vld [vmem:[#allocation16 + $0x170] sm:$0xff] }
 0xa95   :  { %3561 = vmatprep.subr.mxu1 %v3984_v0 }
 0xa96   :  { %3562 = vmatpush3.msra.mxu1 %v1959_v11  ;;  %v2233_v11 = vld [vmem:[#allocation14 + $0x168] sm:$0xff] }
 0xa97   :  { %3563 = vmatprep.subr.mxu1 %v3984_v0 }
 0xa98   :  { %3564 = vmatpush3.msra.mxu1 %v1958_v12  ;;  %v2328_v12 = vld [vmem:[#allocation16 + $0x168] sm:$0xff] }
 0xa99   :  { %3565 = vmatprep.subr.mxu1 %v3984_v0 }
 0xa9a   :  { %3566 = vmatpush3.msra.mxu1 %v1957_v13  ;;  %v2232_v13 = vld [vmem:[#allocation14 + $0x160] sm:$0xff] }
 0xa9b   :  { %3567 = vmatprep.subr.mxu1 %v3984_v0 }
 0xa9c   :  { %3568 = vmatpush3.msra.mxu1 %v1956_v14  ;;  %v2327_v14 = vld [vmem:[#allocation16 + $0x160] sm:$0xff] }
 0xa9d   :  { %3569 = vmatprep.subr.mxu1 %v3984_v0 }
 0xa9e   :  { %3570 = vmatpush3.msra.mxu1 %v1955_v15  ;;  %v2231_v15 = vld [vmem:[#allocation14 + $0x158] sm:$0xff] }
 0xa9f   :  { %3571 = vmatprep.subr.mxu1 %v3984_v0 }
 0xaa0   :  { %3572 = vmatpush3.msra.mxu1 %v1954_v16  ;;  %v2326_v16 = vld [vmem:[#allocation16 + $0x158] sm:$0xff] }
 0xaa1   :  { %3573 = vmatprep.subr.mxu1 %v3984_v0 }
 0xaa2   :  { %3574 = vmatpush3.msra.mxu1 %v1953_v17  ;;  %v2230_v17 = vld [vmem:[#allocation14 + $0x150] sm:$0xff] }
 0xaa3   :  { %3575 = vmatprep.subr.mxu1 %v3984_v0 }
 0xaa4   :  { %3576 = vmatpush3.msra.mxu1 %v1952_v23  ;;  %v2227_v23 = vld [vmem:[#allocation14 + $0x138] sm:$0xff] }
 0xaa5   :  { %3577 = vmatprep.subr.mxu1 %v3984_v0 }
 0xaa6   :  { %3578 = vmatpush3.msra.mxu1 %v1951_v24  ;;  %v2322_v24 = vld [vmem:[#allocation16 + $0x138] sm:$0xff] }
 0xaa7   :  { %3579 = vmatprep.subr.mxu1 %v3984_v0 }
 0xaa8   :  { %3580 = vmatpush3.msra.mxu1 %v1950_v25  ;;  %v2226_v25 = vld [vmem:[#allocation14 + $0x130] sm:$0xff] }
 0xaa9   :  { %3619 = vmatprep.subr.mxu1 %v3984_v0 }
 0xb49   :  { %v1848_v19 = vpop.f32.mrf.mxu1 }
 0xb4a   :  { %v1849_v20 = vadd.f32 %v2467_v18, %v1848_v19  ;;  %v2325_v18 = vld [vmem:[#allocation16 + $0x150] sm:$0xff]  ;;  %v2229_v19 = vld [vmem:[#allocation14 + $0x148] sm:$0xff] }
 0xb4b   :  { %v3513_v21 = vpop.f32.mrf.mxu1 }
 0xb4c   :  { %v1852_v22 = vmax.f32 %v1849_v20, 0.0  ;;  %v2324_v20 = vld [vmem:[#allocation16 + $0x148] sm:$0xff]  ;;  %v2228_v21 = vld [vmem:[#allocation14 + $0x140] sm:$0xff] }
 0xb4e   :  { %3547 = vmatmul.mubr.f32.vlgmr.msra.gmra.mxu0 %v1852_v22  ;;  %v2323_v22 = vld [vmem:[#allocation16 + $0x140] sm:$0xff] }
 0xb4f   :  { %3616 = vmatprep.mubr.msk.f32.mxu0 %vm3985_vm0, %v3984_v0  ;;  %3585 = vmatpush3.msra.mxu0 %v2061_v26  ;;  %v2321_v26 = vld [vmem:[#allocation16 + $0x130] sm:$0xff] }
 0xb50   :  { %3586 = vmatprep.subr.mxu0 %v3984_v0 }
 0xb51   :  { %3587 = vmatpush3.msra.mxu0 %v2060_v27  ;;  %v2225_v27 = vld [vmem:[#allocation14 + $0x128] sm:$0xff] }
 0xb52   :  { %3588 = vmatprep.subr.mxu0 %v3984_v0 }
 0xb53   :  { %3589 = vmatpush3.msra.mxu0 %v2059_v28  ;;  %v2320_v28 = vld [vmem:[#allocation16 + $0x128] sm:$0xff] }
 0xb54   :  { %3590 = vmatprep.subr.mxu0 %v3984_v0 }
 0xb55   :  { %3591 = vmatpush3.msra.mxu0 %v2058_v29  ;;  %v2224_v29 = vld [vmem:[#allocation14 + $0x120] sm:$0xff] }
 0xb56   :  { %3592 = vmatprep.subr.mxu0 %v3984_v0 }
 0xb57   :  { %3593 = vmatpush3.msra.mxu0 %v2057_v31  ;;  %v2319_v31 = vld [vmem:[#allocation16 + $0x120] sm:$0xff] }
 0xb58   :  { %3594 = vmatprep.subr.mxu0 %v3984_v0 }
 0xb59   :  { %3595 = vmatpush3.msra.mxu0 %v2056_v32  ;;  %v2223_v32 = vld [vmem:[#allocation14 + $0x118] sm:$0xff] }
 0xb5a   :  { %3596 = vmatprep.subr.mxu0 %v3984_v0 }
 0xb5b   :  { %3597 = vmatpush3.msra.mxu0 %v2055_v33  ;;  %v2318_v33 = vld [vmem:[#allocation16 + $0x118] sm:$0xff] }
 0xb5c   :  { %3598 = vmatprep.subr.mxu0 %v3984_v0 }
 0xb5d   :  { %3599 = vmatpush3.msra.mxu0 %v2054_v34  ;;  %v2222_v34 = vld [vmem:[#allocation14 + $0x110] sm:$0xff] }
 0xb5e   :  { %3600 = vmatprep.subr.mxu0 %v3984_v0 }
 0xb5f   :  { %3601 = vmatpush3.msra.mxu0 %v2053_v35  ;;  %v2317_v35 = vld [vmem:[#allocation16 + $0x110] sm:$0xff] }
 0xb60   :  { %3602 = vmatprep.subr.mxu0 %v3984_v0 }
 0xb61   :  { %3603 = vmatpush3.msra.mxu0 %v2052_v36  ;;  %v2221_v36 = vld [vmem:[#allocation14 + $0x108] sm:$0xff] }
 0xb62   :  { %3604 = vmatprep.subr.mxu0 %v3984_v0 }
 0xb63   :  { %3605 = vmatpush3.msra.mxu0 %v2051_v37  ;;  %v2316_v37 = vld [vmem:[#allocation16 + $0x108] sm:$0xff] }
 0xb64   :  { %3606 = vmatprep.subr.mxu0 %v3984_v0 }
 0xb65   :  { %3607 = vmatpush3.msra.mxu0 %v2050_v38  ;;  %v2220_v38 = vld [vmem:[#allocation14 + $0x100] sm:$0xff] }
 0xb66   :  { %3608 = vmatprep.subr.mxu0 %v3984_v0 }
 0xb67   :  { %3609 = vmatpush3.msra.mxu0 %v2049_v39  ;;  %v2315_v39 = vld [vmem:[#allocation16 + $0x100] sm:$0xff] }
 0xb68   :  { %3610 = vmatprep.subr.mxu0 %v3984_v0 }
 0xb69   :  { %3611 = vmatpush3.msra.mxu0 %v2048_v58 }
 0xb6a   :  { %3612 = vmatprep.subr.mxu0 %v3984_v0 }
 0xb6b   :  { %3613 = vmatpush3.msra.mxu0 %v2047_v60 }
 0xb6c   :  { %3614 = vmatprep.subr.mxu0 %v3984_v0 }
 0xb6d   :  { %3615 = vmatpush3.msra.mxu0 %v2046_v63 }
 0xb6e   :  { %3654 = vmatprep.subr.mxu0 %v3984_v0 }
 0xc0e   :  { %v1944_v41 = vpop.f32.mrf.mxu0 }
 0xc0f   :  { %v1945_v42 = vadd.f32 %v2469_v40, %v1944_v41 }
 0xc10   :  { %v3548_v45 = vpop.f32.mrf.mxu0 }
 0xc11   :  { %v1948_v46 = vmax.f32 %v1945_v42, 0.0 }
 0xc13   :  { %3582 = vmatmul.mubr.f32.vlgmr.msra.gmra.mxu1 %v1948_v46  ;;  %v2473_v46 = vld [vmem:[%s4646_s12 + $0x2] ss:$0 sm:$0xff]  ;;  %s3919_s12 = scalar_lea.vmem %s2420_s23, 128 }
 0xc14   :  { %3620 = vmatpush3.msra.mxu1 %v2148_v61  ;;  %3651 = vmatprep.mubr.msk.f32.mxu1 %vm3985_vm0, %v3984_v0  ;;  %v2475_v61 = vld [vmem:[%s4648_s14 + $0x2] ss:$0 sm:$0xff]  ;;  %p3920_p3 = scmp.ne.s32.totalorder %s2420_s23, %s3919_s12  ;;  %p3925_p5 = scmp.lt.s32.totalorder %s3919_s12, %s3919_s12 }
 0xc15   :  { %3621 = vmatprep.subr.mxu1 %v3984_v0 }
 0xc16   :  { %3622 = vmatpush3.msra.mxu1 %v2147_v47  ;;  %p3926_p6 = por %p3925_p5, %p3924_p4 }
 0xc17   :  { %3623 = vmatprep.subr.mxu1 %v3984_v0 }
 0xc18   :  { %3624 = vmatpush3.msra.mxu1 %v2146_v2  ;;  %p3927_p7 = pnand %p3926_p6, %p3920_p3 }
 0xc19   :  { %3625 = vmatprep.subr.mxu1 %v3984_v0 }
 0xc1a   :  { %3626 = vmatpush3.msra.mxu1 %v2145_v48 }
 0xc1b   :  { %3627 = vmatprep.subr.mxu1 %v3984_v0 }
 0xc1c   :  { %3628 = vmatpush3.msra.mxu1 %v2144_v49 }
 0xc1d   :  { %3629 = vmatprep.subr.mxu1 %v3984_v0 }
 0xc1e   :  { %3630 = vmatpush3.msra.mxu1 %v2143_v50 }
 0xc1f   :  { %3631 = vmatprep.subr.mxu1 %v3984_v0 }
 0xc20   :  { %3632 = vmatpush3.msra.mxu1 %v2142_v51 }
 0xc21   :  { %3633 = vmatprep.subr.mxu1 %v3984_v0 }
 0xc22   :  { %3634 = vmatpush3.msra.mxu1 %v2141_v52 }
 0xc23   :  { %3635 = vmatprep.subr.mxu1 %v3984_v0 }
 0xc24   :  { %3636 = vmatpush3.msra.mxu1 %v2140_v53 }
 0xc25   :  { %3637 = vmatprep.subr.mxu1 %v3984_v0 }
 0xc26   :  { %3638 = vmatpush3.msra.mxu1 %v2139_v54 }
 0xc27   :  { %3639 = vmatprep.subr.mxu1 %v3984_v0 }
 0xc28   :  { %3640 = vmatpush3.msra.mxu1 %v2138_v55 }
 0xc29   :  { %3641 = vmatprep.subr.mxu1 %v3984_v0 }
 0xc2a   :  { %3642 = vmatpush3.msra.mxu1 %v2137_v56 }
 0xc2b   :  { %3643 = vmatprep.subr.mxu1 %v3984_v0 }
 0xc2c   :  { %3644 = vmatpush3.msra.mxu1 %v2136_v57 }
 0xc2d   :  { %3645 = vmatprep.subr.mxu1 %v3984_v0 }
 0xc2e   :  { %3646 = vmatpush3.msra.mxu1 %v2135_v59 }
 0xc2f   :  { %3647 = vmatprep.subr.mxu1 %v3984_v0 }
 0xc30   :  { %3648 = vmatpush3.msra.mxu1 %v2134_v62 }
 0xc31   :  { %3649 = vmatprep.subr.mxu1 %v3984_v0 }
 0xc32   :  { %3650 = vmatpush3.msra.mxu1 %v2133_v1 }
 0xc33   :  { %3689 = vmatprep.subr.mxu1 %v3984_v0 }
 0xcd3   :  { %v2040_v4 = vpop.f32.mrf.mxu1 }
 0xcd4   :  { %v2041_v5 = vadd.f32 %v2471_v3, %v2040_v4 }
 0xcd5   :  { %v3583_v6 = vpop.f32.mrf.mxu1 }
 0xcd6   :  { %v2044_v7 = vmax.f32 %v2041_v5, 0.0 }
 0xcd8   :  { %3617 = vmatmul.mubr.f32.vlgmr.msra.gmra.mxu0 %v2044_v7  ;;  %3652 = vmatmul.mubr.f32.vlgmr.msra.gmra.mxu1 %v2044_v7 }
 0xcd9   :  { %3655 = vmatpush3.msra.mxu0 %v2235_v30  ;;  %3690 = vmatpush3.msra.mxu1 %v2330_v8 }
 0xcda   :  { %3656 = vmatprep.subr.mxu0 %v3984_v0  ;;  %3691 = vmatprep.subr.mxu1 %v3984_v0 }
 0xcdb   :  { %3657 = vmatpush3.msra.mxu0 %v2234_v9  ;;  %3692 = vmatpush3.msra.mxu1 %v2329_v10 }
 0xcdc   :  { %3658 = vmatprep.subr.mxu0 %v3984_v0  ;;  %3693 = vmatprep.subr.mxu1 %v3984_v0 }
 0xcdd   :  { %3659 = vmatpush3.msra.mxu0 %v2233_v11  ;;  %3694 = vmatpush3.msra.mxu1 %v2328_v12 }
 0xcde   :  { %3660 = vmatprep.subr.mxu0 %v3984_v0  ;;  %3695 = vmatprep.subr.mxu1 %v3984_v0 }
 0xcdf   :  { %3661 = vmatpush3.msra.mxu0 %v2232_v13  ;;  %3696 = vmatpush3.msra.mxu1 %v2327_v14 }
 0xce0   :  { %3662 = vmatprep.subr.mxu0 %v3984_v0  ;;  %3697 = vmatprep.subr.mxu1 %v3984_v0 }
 0xce1   :  { %3663 = vmatpush3.msra.mxu0 %v2231_v15  ;;  %3698 = vmatpush3.msra.mxu1 %v2326_v16 }
 0xce2   :  { %3664 = vmatprep.subr.mxu0 %v3984_v0  ;;  %3699 = vmatprep.subr.mxu1 %v3984_v0 }
 0xce3   :  { %3665 = vmatpush3.msra.mxu0 %v2230_v17  ;;  %3700 = vmatpush3.msra.mxu1 %v2325_v18 }
 0xce4   :  { %3666 = vmatprep.subr.mxu0 %v3984_v0  ;;  %3701 = vmatprep.subr.mxu1 %v3984_v0 }
 0xce5   :  { %3667 = vmatpush3.msra.mxu0 %v2229_v19  ;;  %3702 = vmatpush3.msra.mxu1 %v2324_v20 }
 0xce6   :  { %3668 = vmatprep.subr.mxu0 %v3984_v0  ;;  %3703 = vmatprep.subr.mxu1 %v3984_v0 }
 0xce7   :  { %3669 = vmatpush3.msra.mxu0 %v2228_v21  ;;  %3704 = vmatpush3.msra.mxu1 %v2323_v22 }
 0xce8   :  { %3670 = vmatprep.subr.mxu0 %v3984_v0  ;;  %3705 = vmatprep.subr.mxu1 %v3984_v0 }
 0xce9   :  { %3671 = vmatpush3.msra.mxu0 %v2227_v23  ;;  %3706 = vmatpush3.msra.mxu1 %v2322_v24 }
 0xcea   :  { %3672 = vmatprep.subr.mxu0 %v3984_v0  ;;  %3707 = vmatprep.subr.mxu1 %v3984_v0 }
 0xceb   :  { %3673 = vmatpush3.msra.mxu0 %v2226_v25  ;;  %3708 = vmatpush3.msra.mxu1 %v2321_v26 }
 0xcec   :  { %3674 = vmatprep.subr.mxu0 %v3984_v0  ;;  %3709 = vmatprep.subr.mxu1 %v3984_v0 }
 0xced   :  { %3675 = vmatpush3.msra.mxu0 %v2225_v27  ;;  %3710 = vmatpush3.msra.mxu1 %v2320_v28 }
 0xcee   :  { %3676 = vmatprep.subr.mxu0 %v3984_v0  ;;  %3711 = vmatprep.subr.mxu1 %v3984_v0 }
 0xcef   :  { %3677 = vmatpush3.msra.mxu0 %v2224_v29  ;;  %3712 = vmatpush3.msra.mxu1 %v2319_v31 }
 0xcf0   :  { %3678 = vmatprep.subr.mxu0 %v3984_v0  ;;  %3713 = vmatprep.subr.mxu1 %v3984_v0 }
 0xcf1   :  { %3679 = vmatpush3.msra.mxu0 %v2223_v32  ;;  %3714 = vmatpush3.msra.mxu1 %v2318_v33 }
 0xcf2   :  { %3680 = vmatprep.subr.mxu0 %v3984_v0  ;;  %3715 = vmatprep.subr.mxu1 %v3984_v0 }
 0xcf3   :  { %3681 = vmatpush3.msra.mxu0 %v2222_v34  ;;  %3716 = vmatpush3.msra.mxu1 %v2317_v35 }
 0xcf4   :  { %3682 = vmatprep.subr.mxu0 %v3984_v0  ;;  %3717 = vmatprep.subr.mxu1 %v3984_v0 }
 0xcf5   :  { %3683 = vmatpush3.msra.mxu0 %v2221_v36  ;;  %3718 = vmatpush3.msra.mxu1 %v2316_v37 }
 0xcf6   :  { %3684 = vmatprep.subr.mxu0 %v3984_v0  ;;  %3719 = vmatprep.subr.mxu1 %v3984_v0 }
 0xcf7   :  { %3686 = vmatprep.mubr.msk.f32.mxu0 %vm3985_vm0, %v3984_v0  ;;  %3721 = vmatprep.mubr.msk.f32.mxu1 %vm3985_vm0, %v3984_v0 }
 0xcf8   :  { %3685 = vmatpush3.msra.mxu0 %v2220_v38  ;;  %3720 = vmatpush3.msra.mxu1 %v2315_v39 }
 0xd98   :  { %v2128_v40 = vpop.f32.mrf.mxu0  ;;  %v2215_v41 = vpop.f32.mrf.mxu1 }
 0xd99   :  { %3687 = vmatmul.mubr.f32.vlgmr.msra.gmra.mxu0 %v2128_v40  ;;  %3722 = vmatmul.mubr.f32.vlgmr.msra.gmra.mxu1 %v2215_v41 }
 0xd9a   :  { %v3618_v42 = vpop.f32.mrf.mxu0  ;;  %v3653_v45 = vpop.f32.mrf.mxu1 }
 0xe59   :  { %v2310_v47 = vpop.f32.mrf.mxu0  ;;  %v2405_v0 = vpop.f32.mrf.mxu1 }
 0xe5a   :  { %v2311_v2 = vadd.f32 %v2473_v46, %v2310_v47  ;;  %v2406_v48 = vadd.f32 %v2475_v61, %v2405_v0 }
 0xe5b   :  { %v3688_v49 = vpop.f32.mrf.mxu0  ;;  %v3723_v50 = vpop.f32.mrf.mxu1 }
 0xe5c   :  { %v2409_v51 = vsub.f32 %v4494_v43, %v2311_v2  ;;  %v2410_v52 = vadd.f32 %v2406_v48, %v4496_v44 }
 0xe5e   :  { %2411 = vst [vmem:[#allocation17] sm:$0xff] %v2409_v51  ;;  %2412 = vst [vmem:[#allocation18] sm:$0xff] %v2410_v52 }
 0xe5f   :  { %3930 = shalt.err (!%p3927_p7)
}
 0xe60   :  { %2422 = dma.vmem_to_hbm [thread:$0]  %s2420_s23, 128, %s4649_s15, [#allocation4]  }
 0xe61   :  { %s3939_s28 = scalar_lea.vmem %s2430_s5, 128  ;;  %p3944_p9 = scmp.lt.s32.totalorder %s2430_s5, %s2430_s5 }
 0xe62   :  { %p3940_p8 = scmp.ne.s32.totalorder %s2430_s5, %s3939_s28  ;;  %p3945_p10 = scmp.lt.s32.totalorder %s3939_s28, %s3939_s28 }
 0xe64   :  { %p3946_p11 = por %p3945_p10, %p3944_p9 }
 0xe66   :  { %p3947_p12 = pnand %p3946_p11, %p3940_p8 }
 0xe68   :  { %3950 = shalt.err (!%p3947_p12)
}
 0xe69   :  { %2432 = dma.vmem_to_hbm [thread:$0]  %s2430_s5, 128, %s4650_s16, [#allocation19]  }
 0xe6a   :  { %3969 = dma.done.wait [#allocation4], 128  }
 0xe6b   :  { %3970 = vsyncadd [#allocation4], 4294967168 }
 0xe6c   :  { %3971 = dma.done.wait [#allocation19], 128  }
 0xe6d   :  { %3972 = vsyncadd [#allocation19], 4294967168 }
 0xe6e   :  { %2439 = vsyncpa [#allocation3], 1 }
 0xe6f   :  { %2440 = vsyncpa [#allocation6], 1 }
 0xe70   :  { %2441 = vsyncpa [#allocation9], 1 }
 0xe71   :  { %2442 = vsyncpa [#allocation12], 1 }
 0xe72   :  { %2443 = vsyncpa [#allocation15], 1 }
 0xe73   :  { %2444 = vsyncpa [#allocation4], 1 }
 0xe74   :  { %2445 = vsyncpa [#allocation19], 1 }

</bundles_post_ra>
